<compile_context>
chip_gen: v6e
topology: v6e:2x2x1
jax: 0.10.0
libtpu: 0.0.40
codegen_flags: <defaults>
</compile_context>

<pallas_src>
import functools

import jax
import jax.numpy as jnp
from jax import lax
from jax.experimental import pallas as pl
from jax.experimental.pallas import tpu as pltpu

LN_EPS = 1e-5
INV_SQRT2 = 0.7071067811865476
MASK_BIAS = -1e30  # finite "-inf": same softmax for any row with >=1 valid key

# Slab order of the stacked (D, D) weights (stored as (in_features, out_features)).
_WO, _WF1, _WF2 = range(3)
# Row order of the stacked length-D vectors.
_BO, _G1, _BE1, _BF1, _BF2, _GFF, _BEFF, _G2, _BE2 = range(9)


def _layernorm(v, gamma, beta):
    mean = jnp.mean(v, axis=-1, keepdims=True)
    var = jnp.mean((v - mean) ** 2, axis=-1, keepdims=True)
    return (v - mean) * lax.rsqrt(var + LN_EPS) * gamma + beta


def encoder_layer_kernel(x_ref, bias_ref, wqkv_ref, bqkv_ref, w3_ref, vec_ref,
                         out_ref, *, batch, seq, num_heads):
    d_model = x_ref.shape[-1]
    hd = d_model // num_heads
    rows = batch * seq

    x = x_ref[...]                                # (rows, D) f32
    bias = bias_ref[...].astype(jnp.float32)      # (batch, S, S), hoisted once
    vecs = vec_ref[...]                           # (9, D) f32

    def vrow(i):                                  # (1, D); broadcasts over rows
        return vecs[i:i + 1]

    def mm(a, b_bf16):                            # bf16 MXU matmul, f32 accumulation
        return jnp.dot(a.astype(jnp.bfloat16), b_bf16,
                       preferred_element_type=jnp.float32)

    # ---- fused QKV projection (1/sqrt(hd) already folded into wq/bq) --------
    qkv = mm(x, wqkv_ref[...]) + bqkv_ref[...]    # (rows, 3D) f32

    wo = w3_ref[_WO]                              # (D, D) bf16

    # ---- per-head attention; B stays batched inside each einsum -------------
    # The score contraction uses the 'bqd,bkd->bqk' form (contraction on the
    # lane dim of both operands), the same pattern as the reference flash
    # kernel, so no per-head K transpose is materialized.
    attn_out = jnp.zeros((rows, d_model), jnp.float32)
    for h in range(num_heads):
        def head(col):
            t = qkv[:, col:col + hd]              # static lane slice (rows, hd)
            return t.reshape(batch, seq, hd).astype(jnp.bfloat16)

        qh = head(h * hd)
        kh = head(d_model + h * hd)
        vh = head(2 * d_model + h * hd)

        s = jnp.einsum('bqd,bkd->bqk', qh, kh,
                       preferred_element_type=jnp.float32) + bias
        m = jnp.max(s, axis=-1, keepdims=True)
        e = jnp.exp(s - m)
        p = e * pl.reciprocal(jnp.sum(e, axis=-1, keepdims=True), approx=True)
        o = jnp.einsum('bqk,bkd->bqd', p.astype(jnp.bfloat16), vh,
                       preferred_element_type=jnp.float32)   # (batch, S, hd)

        # head merge fused into the output projection (no lane concat):
        #   concat_h(o_h) @ Wo == sum_h o_h @ Wo[h*hd:(h+1)*hd, :]
        attn_out = attn_out + mm(o.reshape(rows, hd),
                                 wo[h * hd:(h + 1) * hd, :])
    attn_out = attn_out + vrow(_BO)               # self_attention.fc bias

    # ---- residual + LayerNorm1 ----------------------------------------------
    x1 = _layernorm(x + attn_out, vrow(_G1), vrow(_BE1))

    # ---- FeedForwardLayer: x1 + LN_ff(fc2(gelu(fc1(x1)))) --------------------
    h1 = mm(x1, w3_ref[_WF1]) + vrow(_BF1)
    h1 = jax.nn.gelu(h1, approximate=True)        # tanh approx -> EUP slot
    h2 = mm(h1, w3_ref[_WF2]) + vrow(_BF2)
    ff_out = x1 + _layernorm(h2, vrow(_GFF), vrow(_BEFF))

    # ---- residual + LayerNorm2 (x1 is intentionally double-counted: this is
    #      exactly what the torch EncoderLayer + FeedForwardLayer compute) ----
    out_ref[...] = _layernorm(x1 + ff_out, vrow(_G2), vrow(_BE2))


def encoder_layer(x, src_mask, wqkv, bqkv, w3, vstack, *, num_heads,
                  batch_block=None):
    B, S, D = x.shape
    if batch_block is None:
        # v5e / v6e (single TensorCore): fold the whole batch into one grid
        # step.  On v7x pass batch_block = B // 2 only once per-block work is
        # a few us or more; at these demo sizes the split is a net loss.
        batch_block = B
    assert B % batch_block == 0
    n_blocks = B // batch_block
    rows = batch_block * S

    # Free row-major relabel in HBM: the kernel works on a (B*S, D) slab.
    x2d = x.reshape(B * S, D).astype(jnp.float32)
    # Host-side: 0/1 mask -> finite additive bias in bf16 (half the DMA of an
    # f32 mask, no in-kernel select pass).
    bias = jnp.where(src_mask == 0, jnp.float32(MASK_BIAS),
                     jnp.float32(0.0)).astype(jnp.bfloat16)

    kernel = functools.partial(encoder_layer_kernel, batch=batch_block, seq=S,
                               num_heads=num_heads)

    out2d = pl.pallas_call(
        kernel,
        out_shape=jax.ShapeDtypeStruct((B * S, D), jnp.float32),
        grid=(n_blocks,),
        in_specs=[
            pl.BlockSpec((rows, D), lambda i: (i, 0)),
            pl.BlockSpec((batch_block, S, S), lambda i: (i, 0, 0)),
            pl.BlockSpec(wqkv.shape, lambda i: (0, 0)),
            pl.BlockSpec(bqkv.shape, lambda i: (0, 0)),
            pl.BlockSpec(w3.shape, lambda i: (0, 0, 0)),
            pl.BlockSpec(vstack.shape, lambda i: (0, 0)),
        ],
        out_specs=pl.BlockSpec((rows, D), lambda i: (i, 0)),
        compiler_params=pltpu.CompilerParams(
            dimension_semantics=("parallel",),
            vmem_limit_bytes=32 * 1024 * 1024),
    )(x2d, bias, wqkv, bqkv, w3, vstack)
    return out2d.reshape(B, S, D)


def init_params(key, d_model):
    """Synthetic parameters.  Linear weights are stored transposed to
    (in_features, out_features) so kernel/reference compute x @ W + b.
    FeedForwardLayer(d_model) implies hidden = out = d_model."""
    ks = jax.random.split(key, 12)
    D = d_model
    w = lambda k, shape: (0.05 * jax.random.normal(k, shape)).astype(jnp.float32)
    return dict(
        wq=w(ks[0], (D, D)), bq=w(ks[1], (D,)),
        wk=w(ks[2], (D, D)), bk=w(ks[3], (D,)),
        wv=w(ks[4], (D, D)), bv=w(ks[5], (D,)),
        wo=w(ks[6], (D, D)), bo=w(ks[7], (D,)),
        g1=jnp.ones((D,), jnp.float32), be1=jnp.zeros((D,), jnp.float32),
        wf1=w(ks[8], (D, D)), bf1=w(ks[9], (D,)),
        wf2=w(ks[10], (D, D)), bf2=w(ks[11], (D,)),
        gff=jnp.ones((D,), jnp.float32), beff=jnp.zeros((D,), jnp.float32),
        g2=jnp.ones((D,), jnp.float32), be2=jnp.zeros((D,), jnp.float32),
    )


def prepare_params(params, *, num_heads):
    """One-time host-side prep: fold 1/sqrt(head_dim) into wq/bq, fuse QKV
    weights into a single (D, 3D) slab, store all matmul weights in bf16, and
    stack the remaining vectors into one (9, D) array."""
    D = params["wq"].shape[0]
    scale = jnp.float32(1.0 / ((D // num_heads) ** 0.5))
    wqkv = jnp.concatenate([params["wq"] * scale, params["wk"], params["wv"]],
                           axis=1).astype(jnp.bfloat16)              # (D, 3D)
    bqkv = jnp.concatenate([params["bq"] * scale, params["bk"],
                            params["bv"]])[None, :].astype(jnp.float32)  # (1, 3D)
    w3 = jnp.stack([params["wo"], params["wf1"], params["wf2"]],
                   axis=0).astype(jnp.bfloat16)                      # (3, D, D)
    vstack = jnp.stack([params["bo"], params["g1"], params["be1"],
                        params["bf1"], params["bf2"], params["gff"],
                        params["beff"], params["g2"], params["be2"]],
                       axis=0).astype(jnp.float32)                   # (9, D)
    return wqkv, bqkv, w3, vstack


def reference_encoder_layer(x, src_mask, params, *, num_heads):
    """Plain-JAX f32 mirror of the PyTorch EncoderLayer forward (eval mode)."""
    B, S, D = x.shape
    hd = D // num_heads
    lin = lambda v, w, b: v @ w + b

    def ln(v, g, b):
        m = jnp.mean(v, axis=-1, keepdims=True)
        var = jnp.mean((v - m) ** 2, axis=-1, keepdims=True)
        return (v - m) / jnp.sqrt(var + LN_EPS) * g + b

    def proj(t):
        return lin(x, params["w" + t], params["b" + t]).reshape(
            B, S, num_heads, hd).transpose(0, 2, 1, 3)

    q, k, v = proj("q"), proj("k"), proj("v")
    scores = jnp.einsum("bhqd,bhkd->bhqk", q, k) / jnp.sqrt(jnp.float32(hd))
    scores = jnp.where(src_mask[:, None, :, :] == 0, -jnp.inf, scores)
    attn = jax.nn.softmax(scores, axis=-1)
    av = jnp.einsum("bhqk,bhkd->bhqd", attn, v).transpose(0, 2, 1, 3).reshape(B, S, D)
    attn_out = lin(av, params["wo"], params["bo"])

    x1 = ln(x + attn_out, params["g1"], params["be1"])
    h1 = lin(x1, params["wf1"], params["bf1"])
    h1 = 0.5 * h1 * (1.0 + lax.erf(h1 * INV_SQRT2))   # exact GELU (torch default)
    h2 = lin(h1, params["wf2"], params["bf2"])
    ff = x1 + ln(h2, params["gff"], params["beff"])
    return ln(x1 + ff, params["g2"], params["be2"])


if __name__ == "__main__":
    # Lane-dense configs only (D a multiple of 128); sub-128 d_model should be
    # padded host-side rather than run lane-sparse (v5e masked-store penalty).
    configs = [
        dict(B=2, S=8, D=128, H=4),    # hd = 32
        dict(B=2, S=16, D=256, H=8),   # hd = 32
    ]
    key = jax.random.PRNGKey(0)
    for cfg in configs:
        B, S, D, H = cfg["B"], cfg["S"], cfg["D"], cfg["H"]
        key, kx, kp = jax.random.split(key, 3)
        x = jax.random.normal(kx, (B, S, D), dtype=jnp.float32)
        # 1 = attend, 0 = masked; mask the last key so masked_fill is exercised
        # while every query row keeps valid keys.
        src_mask = jnp.ones((B, S, S), jnp.float32).at[:, :, -1].set(0.0)

        params = init_params(kp, D)
        wqkv, bqkv, w3, vstack = prepare_params(params, num_heads=H)

        out = jax.block_until_ready(
            encoder_layer(x, src_mask, wqkv, bqkv, w3, vstack, num_heads=H))
        ref = reference_encoder_layer(x, src_mask, params, num_heads=H)

        assert out.shape == (B, S, D)
        assert bool(jnp.all(jnp.isfinite(out))), f"non-finite output for {cfg}"
        # Tolerance accounts for bf16 MXU operands, tanh-GELU, and the
        # approximate EUP reciprocal (kernel) vs. exact f32 erf/softmax (ref).
        assert jnp.allclose(out, ref, rtol=5e-2, atol=5e-2), \
            f"mismatch vs reference for config {cfg}"

    print("KERNEL_OK")
</pallas_src>

<mosaic_0001>
module attributes {stable_mosaic.version = 11 : i64} {
  func.func @encoder_layer_kernel(%arg0: i32, %arg1: memref<16x128xf32, #tpu.memory_space<vmem>>, %arg2: memref<2x8x8xbf16, #tpu.memory_space<vmem>>, %arg3: memref<128x384xbf16, #tpu.memory_space<vmem>>, %arg4: memref<1x384xf32, #tpu.memory_space<vmem>>, %arg5: memref<3x128x128xbf16, #tpu.memory_space<vmem>>, %arg6: memref<9x128xf32, #tpu.memory_space<vmem>>, %arg7: memref<16x128xf32, #tpu.memory_space<vmem>>) attributes {dimension_semantics = [#tpu.dimension_semantics<parallel>], iteration_bounds = array<i64: 1>, scalar_prefetch = 0 : i64, scratch_operands = 0 : i64, tpu.core_type = #tpu.core_type<tc>, window_params = [{transform_indices = @transform_0, window_bounds = array<i64: 16, 128>}, {transform_indices = @transform_1, window_bounds = array<i64: 2, 8, 8>}, {pipeline_mode = #tpu.pipeline_mode<synchronous>, transform_indices = @transform_2, window_bounds = array<i64: 128, 384>}, {pipeline_mode = #tpu.pipeline_mode<synchronous>, transform_indices = @transform_3, window_bounds = array<i64: 1, 384>}, {pipeline_mode = #tpu.pipeline_mode<synchronous>, transform_indices = @transform_4, window_bounds = array<i64: 3, 128, 128>}, {pipeline_mode = #tpu.pipeline_mode<synchronous>, transform_indices = @transform_5, window_bounds = array<i64: 9, 128>}, {transform_indices = @transform_6, window_bounds = array<i64: 16, 128>}]} {
    %c0 = arith.constant 0 : index
    %c0_0 = arith.constant 0 : index
    %0 = vector.load %arg1[%c0, %c0_0] : memref<16x128xf32, #tpu.memory_space<vmem>>, vector<16x128xf32>
    %c0_1 = arith.constant 0 : index
    %c0_2 = arith.constant 0 : index
    %c0_3 = arith.constant 0 : index
    %1 = vector.load %arg2[%c0_1, %c0_2, %c0_3] : memref<2x8x8xbf16, #tpu.memory_space<vmem>>, vector<2x8x8xbf16>
    %2 = arith.extf %1 : vector<2x8x8xbf16> to vector<2x8x8xf32>
    %c0_4 = arith.constant 0 : index
    %c0_5 = arith.constant 0 : index
    %3 = vector.load %arg6[%c0_4, %c0_5] : memref<9x128xf32, #tpu.memory_space<vmem>>, vector<9x128xf32>
    %c0_6 = arith.constant 0 : index
    %c0_7 = arith.constant 0 : index
    %4 = vector.load %arg3[%c0_6, %c0_7] : memref<128x384xbf16, #tpu.memory_space<vmem>>, vector<128x384xbf16>
    %5 = arith.truncf %0 : vector<16x128xf32> to vector<16x128xbf16>
    %cst = arith.constant dense<0.000000e+00> : vector<16x384xf32>
    %6 = tpu.matmul %5, %4, %cst {dimension_numbers = #tpu.dot_dimension_numbers<[1], [0], [0], [1], [0, 0, 1, 1], [], []>} : vector<16x128xbf16>, vector<128x384xbf16>, vector<16x384xf32> -> vector<16x384xf32>
    %c0_8 = arith.constant 0 : index
    %c0_9 = arith.constant 0 : index
    %7 = vector.load %arg4[%c0_8, %c0_9] : memref<1x384xf32, #tpu.memory_space<vmem>>, vector<1x384xf32>
    %8 = vector.broadcast %7 : vector<1x384xf32> to vector<16x384xf32>
    %9 = arith.addf %6, %8 : vector<16x384xf32>
    %c0_10 = arith.constant 0 : index
    %c0_11 = arith.constant 0 : index
    %c0_12 = arith.constant 0 : index
    %10 = vector.load %arg5[%c0_10, %c0_11, %c0_12] : memref<3x128x128xbf16, #tpu.memory_space<vmem>>, vector<1x128x128xbf16>
    %11 = vector.shape_cast %10 : vector<1x128x128xbf16> to vector<128x128xbf16>
    %cst_13 = arith.constant 0.000000e+00 : f32
    %12 = vector.broadcast %cst_13 : f32 to vector<16x128xf32>
    %13 = vector.extract_strided_slice %9 {offsets = [0, 0], sizes = [16, 32], strides = [1, 1]} : vector<16x384xf32> to vector<16x32xf32>
    %14 = vector.shape_cast %13 : vector<16x32xf32> to vector<2x8x32xf32>
    %15 = arith.truncf %14 : vector<2x8x32xf32> to vector<2x8x32xbf16>
    %16 = vector.extract_strided_slice %9 {offsets = [0, 128], sizes = [16, 32], strides = [1, 1]} : vector<16x384xf32> to vector<16x32xf32>
    %17 = vector.shape_cast %16 : vector<16x32xf32> to vector<2x8x32xf32>
    %18 = arith.truncf %17 : vector<2x8x32xf32> to vector<2x8x32xbf16>
    %19 = vector.extract_strided_slice %9 {offsets = [0, 256], sizes = [16, 32], strides = [1, 1]} : vector<16x384xf32> to vector<16x32xf32>
    %20 = vector.shape_cast %19 : vector<16x32xf32> to vector<2x8x32xf32>
    %21 = arith.truncf %20 : vector<2x8x32xf32> to vector<2x8x32xbf16>
    "tpu.trace_start"() <{level = 10 : i32, message = "bqd,bkd->bqk"}> : () -> ()
    %cst_14 = arith.constant dense<0.000000e+00> : vector<2x8x8xf32>
    %22 = tpu.matmul %15, %18, %cst_14 {dimension_numbers = #tpu.dot_dimension_numbers<[2], [2], [1], [1], [0, 0, 0, 1, 1, 1], [0], [0]>} : vector<2x8x32xbf16>, vector<2x8x32xbf16>, vector<2x8x8xf32> -> vector<2x8x8xf32>
    "tpu.trace_stop"() : () -> ()
    %23 = arith.addf %22, %2 : vector<2x8x8xf32>
    %cst_15 = arith.constant dense<0xFF800000> : vector<2x8xf32>
    %24 = vector.multi_reduction <maximumf>, %23, %cst_15 [2] : vector<2x8x8xf32> to vector<2x8xf32>
    %25 = vector.shape_cast %24 : vector<2x8xf32> to vector<2x8x1xf32>
    %26 = vector.broadcast %25 : vector<2x8x1xf32> to vector<2x8x8xf32>
    %27 = arith.subf %23, %26 : vector<2x8x8xf32>
    %28 = math.exp %27 : vector<2x8x8xf32>
    %cst_16 = arith.constant dense<0.000000e+00> : vector<2x8xf32>
    %29 = vector.multi_reduction <add>, %28, %cst_16 [2] : vector<2x8x8xf32> to vector<2x8xf32>
    %30 = vector.shape_cast %29 : vector<2x8xf32> to vector<2x8x1xf32>
    %31 = tpu.reciprocal %30 {approx = true} : vector<2x8x1xf32> -> vector<2x8x1xf32>
    %32 = vector.broadcast %31 : vector<2x8x1xf32> to vector<2x8x8xf32>
    %33 = arith.mulf %28, %32 : vector<2x8x8xf32>
    %34 = arith.truncf %33 : vector<2x8x8xf32> to vector<2x8x8xbf16>
    "tpu.trace_start"() <{level = 10 : i32, message = "bqk,bkd->bqd"}> : () -> ()
    %cst_17 = arith.constant dense<0.000000e+00> : vector<2x8x32xf32>
    %35 = tpu.matmul %34, %21, %cst_17 {dimension_numbers = #tpu.dot_dimension_numbers<[2], [1], [1], [2], [0, 0, 0, 1, 1, 2], [0], [0]>} : vector<2x8x8xbf16>, vector<2x8x32xbf16>, vector<2x8x32xf32> -> vector<2x8x32xf32>
    "tpu.trace_stop"() : () -> ()
    %36 = vector.shape_cast %35 : vector<2x8x32xf32> to vector<16x32xf32>
    %37 = vector.extract_strided_slice %11 {offsets = [0, 0], sizes = [32, 128], strides = [1, 1]} : vector<128x128xbf16> to vector<32x128xbf16>
    %38 = arith.truncf %36 : vector<16x32xf32> to vector<16x32xbf16>
    %cst_18 = arith.constant dense<0.000000e+00> : vector<16x128xf32>
    %39 = tpu.matmul %38, %37, %cst_18 {dimension_numbers = #tpu.dot_dimension_numbers<[1], [0], [0], [1], [0, 0, 1, 1], [], []>} : vector<16x32xbf16>, vector<32x128xbf16>, vector<16x128xf32> -> vector<16x128xf32>
    %40 = arith.addf %12, %39 : vector<16x128xf32>
    %41 = vector.extract_strided_slice %9 {offsets = [0, 32], sizes = [16, 32], strides = [1, 1]} : vector<16x384xf32> to vector<16x32xf32>
    %42 = vector.shape_cast %41 : vector<16x32xf32> to vector<2x8x32xf32>
    %43 = arith.truncf %42 : vector<2x8x32xf32> to vector<2x8x32xbf16>
    %44 = vector.extract_strided_slice %9 {offsets = [0, 160], sizes = [16, 32], strides = [1, 1]} : vector<16x384xf32> to vector<16x32xf32>
    %45 = vector.shape_cast %44 : vector<16x32xf32> to vector<2x8x32xf32>
    %46 = arith.truncf %45 : vector<2x8x32xf32> to vector<2x8x32xbf16>
    %47 = vector.extract_strided_slice %9 {offsets = [0, 288], sizes = [16, 32], strides = [1, 1]} : vector<16x384xf32> to vector<16x32xf32>
    %48 = vector.shape_cast %47 : vector<16x32xf32> to vector<2x8x32xf32>
    %49 = arith.truncf %48 : vector<2x8x32xf32> to vector<2x8x32xbf16>
    "tpu.trace_start"() <{level = 10 : i32, message = "bqd,bkd->bqk"}> : () -> ()
    %cst_19 = arith.constant dense<0.000000e+00> : vector<2x8x8xf32>
    %50 = tpu.matmul %43, %46, %cst_19 {dimension_numbers = #tpu.dot_dimension_numbers<[2], [2], [1], [1], [0, 0, 0, 1, 1, 1], [0], [0]>} : vector<2x8x32xbf16>, vector<2x8x32xbf16>, vector<2x8x8xf32> -> vector<2x8x8xf32>
    "tpu.trace_stop"() : () -> ()
    %51 = arith.addf %50, %2 : vector<2x8x8xf32>
    %cst_20 = arith.constant dense<0xFF800000> : vector<2x8xf32>
    %52 = vector.multi_reduction <maximumf>, %51, %cst_20 [2] : vector<2x8x8xf32> to vector<2x8xf32>
    %53 = vector.shape_cast %52 : vector<2x8xf32> to vector<2x8x1xf32>
    %54 = vector.broadcast %53 : vector<2x8x1xf32> to vector<2x8x8xf32>
    %55 = arith.subf %51, %54 : vector<2x8x8xf32>
    %56 = math.exp %55 : vector<2x8x8xf32>
    %cst_21 = arith.constant dense<0.000000e+00> : vector<2x8xf32>
    %57 = vector.multi_reduction <add>, %56, %cst_21 [2] : vector<2x8x8xf32> to vector<2x8xf32>
    %58 = vector.shape_cast %57 : vector<2x8xf32> to vector<2x8x1xf32>
    %59 = tpu.reciprocal %58 {approx = true} : vector<2x8x1xf32> -> vector<2x8x1xf32>
    %60 = vector.broadcast %59 : vector<2x8x1xf32> to vector<2x8x8xf32>
    %61 = arith.mulf %56, %60 : vector<2x8x8xf32>
    %62 = arith.truncf %61 : vector<2x8x8xf32> to vector<2x8x8xbf16>
    "tpu.trace_start"() <{level = 10 : i32, message = "bqk,bkd->bqd"}> : () -> ()
    %cst_22 = arith.constant dense<0.000000e+00> : vector<2x8x32xf32>
    %63 = tpu.matmul %62, %49, %cst_22 {dimension_numbers = #tpu.dot_dimension_numbers<[2], [1], [1], [2], [0, 0, 0, 1, 1, 2], [0], [0]>} : vector<2x8x8xbf16>, vector<2x8x32xbf16>, vector<2x8x32xf32> -> vector<2x8x32xf32>
    "tpu.trace_stop"() : () -> ()
    %64 = vector.shape_cast %63 : vector<2x8x32xf32> to vector<16x32xf32>
    %65 = vector.extract_strided_slice %11 {offsets = [32, 0], sizes = [32, 128], strides = [1, 1]} : vector<128x128xbf16> to vector<32x128xbf16>
    %66 = arith.truncf %64 : vector<16x32xf32> to vector<16x32xbf16>
    %cst_23 = arith.constant dense<0.000000e+00> : vector<16x128xf32>
    %67 = tpu.matmul %66, %65, %cst_23 {dimension_numbers = #tpu.dot_dimension_numbers<[1], [0], [0], [1], [0, 0, 1, 1], [], []>} : vector<16x32xbf16>, vector<32x128xbf16>, vector<16x128xf32> -> vector<16x128xf32>
    %68 = arith.addf %40, %67 : vector<16x128xf32>
    %69 = vector.extract_strided_slice %9 {offsets = [0, 64], sizes = [16, 32], strides = [1, 1]} : vector<16x384xf32> to vector<16x32xf32>
    %70 = vector.shape_cast %69 : vector<16x32xf32> to vector<2x8x32xf32>
    %71 = arith.truncf %70 : vector<2x8x32xf32> to vector<2x8x32xbf16>
    %72 = vector.extract_strided_slice %9 {offsets = [0, 192], sizes = [16, 32], strides = [1, 1]} : vector<16x384xf32> to vector<16x32xf32>
    %73 = vector.shape_cast %72 : vector<16x32xf32> to vector<2x8x32xf32>
    %74 = arith.truncf %73 : vector<2x8x32xf32> to vector<2x8x32xbf16>
    %75 = vector.extract_strided_slice %9 {offsets = [0, 320], sizes = [16, 32], strides = [1, 1]} : vector<16x384xf32> to vector<16x32xf32>
    %76 = vector.shape_cast %75 : vector<16x32xf32> to vector<2x8x32xf32>
    %77 = arith.truncf %76 : vector<2x8x32xf32> to vector<2x8x32xbf16>
    "tpu.trace_start"() <{level = 10 : i32, message = "bqd,bkd->bqk"}> : () -> ()
    %cst_24 = arith.constant dense<0.000000e+00> : vector<2x8x8xf32>
    %78 = tpu.matmul %71, %74, %cst_24 {dimension_numbers = #tpu.dot_dimension_numbers<[2], [2], [1], [1], [0, 0, 0, 1, 1, 1], [0], [0]>} : vector<2x8x32xbf16>, vector<2x8x32xbf16>, vector<2x8x8xf32> -> vector<2x8x8xf32>
    "tpu.trace_stop"() : () -> ()
    %79 = arith.addf %78, %2 : vector<2x8x8xf32>
    %cst_25 = arith.constant dense<0xFF800000> : vector<2x8xf32>
    %80 = vector.multi_reduction <maximumf>, %79, %cst_25 [2] : vector<2x8x8xf32> to vector<2x8xf32>
    %81 = vector.shape_cast %80 : vector<2x8xf32> to vector<2x8x1xf32>
    %82 = vector.broadcast %81 : vector<2x8x1xf32> to vector<2x8x8xf32>
    %83 = arith.subf %79, %82 : vector<2x8x8xf32>
    %84 = math.exp %83 : vector<2x8x8xf32>
    %cst_26 = arith.constant dense<0.000000e+00> : vector<2x8xf32>
    %85 = vector.multi_reduction <add>, %84, %cst_26 [2] : vector<2x8x8xf32> to vector<2x8xf32>
    %86 = vector.shape_cast %85 : vector<2x8xf32> to vector<2x8x1xf32>
    %87 = tpu.reciprocal %86 {approx = true} : vector<2x8x1xf32> -> vector<2x8x1xf32>
    %88 = vector.broadcast %87 : vector<2x8x1xf32> to vector<2x8x8xf32>
    %89 = arith.mulf %84, %88 : vector<2x8x8xf32>
    %90 = arith.truncf %89 : vector<2x8x8xf32> to vector<2x8x8xbf16>
    "tpu.trace_start"() <{level = 10 : i32, message = "bqk,bkd->bqd"}> : () -> ()
    %cst_27 = arith.constant dense<0.000000e+00> : vector<2x8x32xf32>
    %91 = tpu.matmul %90, %77, %cst_27 {dimension_numbers = #tpu.dot_dimension_numbers<[2], [1], [1], [2], [0, 0, 0, 1, 1, 2], [0], [0]>} : vector<2x8x8xbf16>, vector<2x8x32xbf16>, vector<2x8x32xf32> -> vector<2x8x32xf32>
    "tpu.trace_stop"() : () -> ()
    %92 = vector.shape_cast %91 : vector<2x8x32xf32> to vector<16x32xf32>
    %93 = vector.extract_strided_slice %11 {offsets = [64, 0], sizes = [32, 128], strides = [1, 1]} : vector<128x128xbf16> to vector<32x128xbf16>
    %94 = arith.truncf %92 : vector<16x32xf32> to vector<16x32xbf16>
    %cst_28 = arith.constant dense<0.000000e+00> : vector<16x128xf32>
    %95 = tpu.matmul %94, %93, %cst_28 {dimension_numbers = #tpu.dot_dimension_numbers<[1], [0], [0], [1], [0, 0, 1, 1], [], []>} : vector<16x32xbf16>, vector<32x128xbf16>, vector<16x128xf32> -> vector<16x128xf32>
    %96 = arith.addf %68, %95 : vector<16x128xf32>
    %97 = vector.extract_strided_slice %9 {offsets = [0, 96], sizes = [16, 32], strides = [1, 1]} : vector<16x384xf32> to vector<16x32xf32>
    %98 = vector.shape_cast %97 : vector<16x32xf32> to vector<2x8x32xf32>
    %99 = arith.truncf %98 : vector<2x8x32xf32> to vector<2x8x32xbf16>
    %100 = vector.extract_strided_slice %9 {offsets = [0, 224], sizes = [16, 32], strides = [1, 1]} : vector<16x384xf32> to vector<16x32xf32>
    %101 = vector.shape_cast %100 : vector<16x32xf32> to vector<2x8x32xf32>
    %102 = arith.truncf %101 : vector<2x8x32xf32> to vector<2x8x32xbf16>
    %103 = vector.extract_strided_slice %9 {offsets = [0, 352], sizes = [16, 32], strides = [1, 1]} : vector<16x384xf32> to vector<16x32xf32>
    %104 = vector.shape_cast %103 : vector<16x32xf32> to vector<2x8x32xf32>
    %105 = arith.truncf %104 : vector<2x8x32xf32> to vector<2x8x32xbf16>
    "tpu.trace_start"() <{level = 10 : i32, message = "bqd,bkd->bqk"}> : () -> ()
    %cst_29 = arith.constant dense<0.000000e+00> : vector<2x8x8xf32>
    %106 = tpu.matmul %99, %102, %cst_29 {dimension_numbers = #tpu.dot_dimension_numbers<[2], [2], [1], [1], [0, 0, 0, 1, 1, 1], [0], [0]>} : vector<2x8x32xbf16>, vector<2x8x32xbf16>, vector<2x8x8xf32> -> vector<2x8x8xf32>
    "tpu.trace_stop"() : () -> ()
    %107 = arith.addf %106, %2 : vector<2x8x8xf32>
    %cst_30 = arith.constant dense<0xFF800000> : vector<2x8xf32>
    %108 = vector.multi_reduction <maximumf>, %107, %cst_30 [2] : vector<2x8x8xf32> to vector<2x8xf32>
    %109 = vector.shape_cast %108 : vector<2x8xf32> to vector<2x8x1xf32>
    %110 = vector.broadcast %109 : vector<2x8x1xf32> to vector<2x8x8xf32>
    %111 = arith.subf %107, %110 : vector<2x8x8xf32>
    %112 = math.exp %111 : vector<2x8x8xf32>
    %cst_31 = arith.constant dense<0.000000e+00> : vector<2x8xf32>
    %113 = vector.multi_reduction <add>, %112, %cst_31 [2] : vector<2x8x8xf32> to vector<2x8xf32>
    %114 = vector.shape_cast %113 : vector<2x8xf32> to vector<2x8x1xf32>
    %115 = tpu.reciprocal %114 {approx = true} : vector<2x8x1xf32> -> vector<2x8x1xf32>
    %116 = vector.broadcast %115 : vector<2x8x1xf32> to vector<2x8x8xf32>
    %117 = arith.mulf %112, %116 : vector<2x8x8xf32>
    %118 = arith.truncf %117 : vector<2x8x8xf32> to vector<2x8x8xbf16>
    "tpu.trace_start"() <{level = 10 : i32, message = "bqk,bkd->bqd"}> : () -> ()
    %cst_32 = arith.constant dense<0.000000e+00> : vector<2x8x32xf32>
    %119 = tpu.matmul %118, %105, %cst_32 {dimension_numbers = #tpu.dot_dimension_numbers<[2], [1], [1], [2], [0, 0, 0, 1, 1, 2], [0], [0]>} : vector<2x8x8xbf16>, vector<2x8x32xbf16>, vector<2x8x32xf32> -> vector<2x8x32xf32>
    "tpu.trace_stop"() : () -> ()
    %120 = vector.shape_cast %119 : vector<2x8x32xf32> to vector<16x32xf32>
    %121 = vector.extract_strided_slice %11 {offsets = [96, 0], sizes = [32, 128], strides = [1, 1]} : vector<128x128xbf16> to vector<32x128xbf16>
    %122 = arith.truncf %120 : vector<16x32xf32> to vector<16x32xbf16>
    %cst_33 = arith.constant dense<0.000000e+00> : vector<16x128xf32>
    %123 = tpu.matmul %122, %121, %cst_33 {dimension_numbers = #tpu.dot_dimension_numbers<[1], [0], [0], [1], [0, 0, 1, 1], [], []>} : vector<16x32xbf16>, vector<32x128xbf16>, vector<16x128xf32> -> vector<16x128xf32>
    %124 = arith.addf %96, %123 : vector<16x128xf32>
    %125 = vector.extract_strided_slice %3 {offsets = [0, 0], sizes = [1, 128], strides = [1, 1]} : vector<9x128xf32> to vector<1x128xf32>
    %126 = vector.broadcast %125 : vector<1x128xf32> to vector<16x128xf32>
    %127 = arith.addf %124, %126 : vector<16x128xf32>
    %128 = arith.addf %0, %127 : vector<16x128xf32>
    %129 = vector.extract_strided_slice %3 {offsets = [1, 0], sizes = [1, 128], strides = [1, 1]} : vector<9x128xf32> to vector<1x128xf32>
    %130 = vector.extract_strided_slice %3 {offsets = [2, 0], sizes = [1, 128], strides = [1, 1]} : vector<9x128xf32> to vector<1x128xf32>
    %cst_34 = arith.constant dense<0.000000e+00> : vector<16xf32>
    %131 = vector.multi_reduction <add>, %128, %cst_34 [1] : vector<16x128xf32> to vector<16xf32>
    %132 = vector.shape_cast %131 : vector<16xf32> to vector<16x1xf32>
    %cst_35 = arith.constant 1.280000e+02 : f32
    %133 = vector.broadcast %cst_35 : f32 to vector<16x1xf32>
    %134 = arith.divf %132, %133 : vector<16x1xf32>
    %135 = vector.broadcast %134 : vector<16x1xf32> to vector<16x128xf32>
    %136 = arith.subf %128, %135 : vector<16x128xf32>
    %137 = arith.mulf %136, %136 : vector<16x128xf32>
    %cst_36 = arith.constant dense<0.000000e+00> : vector<16xf32>
    %138 = vector.multi_reduction <add>, %137, %cst_36 [1] : vector<16x128xf32> to vector<16xf32>
    %139 = vector.shape_cast %138 : vector<16xf32> to vector<16x1xf32>
    %cst_37 = arith.constant 1.280000e+02 : f32
    %140 = vector.broadcast %cst_37 : f32 to vector<16x1xf32>
    %141 = arith.divf %139, %140 : vector<16x1xf32>
    %142 = vector.broadcast %134 : vector<16x1xf32> to vector<16x128xf32>
    %143 = arith.subf %128, %142 : vector<16x128xf32>
    %cst_38 = arith.constant 9.99999974E-6 : f32
    %144 = vector.broadcast %cst_38 : f32 to vector<16x1xf32>
    %145 = arith.addf %141, %144 : vector<16x1xf32>
    %146 = math.rsqrt %145 : vector<16x1xf32>
    %147 = vector.broadcast %146 : vector<16x1xf32> to vector<16x128xf32>
    %148 = arith.mulf %143, %147 : vector<16x128xf32>
    %149 = vector.broadcast %129 : vector<1x128xf32> to vector<16x128xf32>
    %150 = arith.mulf %148, %149 : vector<16x128xf32>
    %151 = vector.broadcast %130 : vector<1x128xf32> to vector<16x128xf32>
    %152 = arith.addf %150, %151 : vector<16x128xf32>
    %c1 = arith.constant 1 : index
    %c0_39 = arith.constant 0 : index
    %c0_40 = arith.constant 0 : index
    %153 = vector.load %arg5[%c1, %c0_39, %c0_40] : memref<3x128x128xbf16, #tpu.memory_space<vmem>>, vector<1x128x128xbf16>
    %154 = vector.shape_cast %153 : vector<1x128x128xbf16> to vector<128x128xbf16>
    %155 = arith.truncf %152 : vector<16x128xf32> to vector<16x128xbf16>
    %cst_41 = arith.constant dense<0.000000e+00> : vector<16x128xf32>
    %156 = tpu.matmul %155, %154, %cst_41 {dimension_numbers = #tpu.dot_dimension_numbers<[1], [0], [0], [1], [0, 0, 1, 1], [], []>} : vector<16x128xbf16>, vector<128x128xbf16>, vector<16x128xf32> -> vector<16x128xf32>
    %157 = vector.extract_strided_slice %3 {offsets = [3, 0], sizes = [1, 128], strides = [1, 1]} : vector<9x128xf32> to vector<1x128xf32>
    %158 = vector.broadcast %157 : vector<1x128xf32> to vector<16x128xf32>
    %159 = arith.addf %156, %158 : vector<16x128xf32>
    %160 = arith.mulf %159, %159 : vector<16x128xf32>
    %161 = arith.mulf %159, %160 : vector<16x128xf32>
    %cst_42 = arith.constant 4.471500e-02 : f32
    %162 = vector.broadcast %cst_42 : f32 to vector<16x128xf32>
    %163 = arith.mulf %162, %161 : vector<16x128xf32>
    %164 = arith.addf %159, %163 : vector<16x128xf32>
    %cst_43 = arith.constant 0.797884583 : f32
    %165 = vector.broadcast %cst_43 : f32 to vector<16x128xf32>
    %166 = arith.mulf %165, %164 : vector<16x128xf32>
    %167 = math.tanh %166 : vector<16x128xf32>
    %cst_44 = arith.constant 1.000000e+00 : f32
    %168 = vector.broadcast %cst_44 : f32 to vector<16x128xf32>
    %169 = arith.addf %168, %167 : vector<16x128xf32>
    %cst_45 = arith.constant 5.000000e-01 : f32
    %170 = vector.broadcast %cst_45 : f32 to vector<16x128xf32>
    %171 = arith.mulf %170, %169 : vector<16x128xf32>
    %172 = arith.mulf %159, %171 : vector<16x128xf32>
    %c2 = arith.constant 2 : index
    %c0_46 = arith.constant 0 : index
    %c0_47 = arith.constant 0 : index
    %173 = vector.load %arg5[%c2, %c0_46, %c0_47] : memref<3x128x128xbf16, #tpu.memory_space<vmem>>, vector<1x128x128xbf16>
    %174 = vector.shape_cast %173 : vector<1x128x128xbf16> to vector<128x128xbf16>
    %175 = arith.truncf %172 : vector<16x128xf32> to vector<16x128xbf16>
    %cst_48 = arith.constant dense<0.000000e+00> : vector<16x128xf32>
    %176 = tpu.matmul %175, %174, %cst_48 {dimension_numbers = #tpu.dot_dimension_numbers<[1], [0], [0], [1], [0, 0, 1, 1], [], []>} : vector<16x128xbf16>, vector<128x128xbf16>, vector<16x128xf32> -> vector<16x128xf32>
    %177 = vector.extract_strided_slice %3 {offsets = [4, 0], sizes = [1, 128], strides = [1, 1]} : vector<9x128xf32> to vector<1x128xf32>
    %178 = vector.broadcast %177 : vector<1x128xf32> to vector<16x128xf32>
    %179 = arith.addf %176, %178 : vector<16x128xf32>
    %180 = vector.extract_strided_slice %3 {offsets = [5, 0], sizes = [1, 128], strides = [1, 1]} : vector<9x128xf32> to vector<1x128xf32>
    %181 = vector.extract_strided_slice %3 {offsets = [6, 0], sizes = [1, 128], strides = [1, 1]} : vector<9x128xf32> to vector<1x128xf32>
    %cst_49 = arith.constant dense<0.000000e+00> : vector<16xf32>
    %182 = vector.multi_reduction <add>, %179, %cst_49 [1] : vector<16x128xf32> to vector<16xf32>
    %183 = vector.shape_cast %182 : vector<16xf32> to vector<16x1xf32>
    %cst_50 = arith.constant 1.280000e+02 : f32
    %184 = vector.broadcast %cst_50 : f32 to vector<16x1xf32>
    %185 = arith.divf %183, %184 : vector<16x1xf32>
    %186 = vector.broadcast %185 : vector<16x1xf32> to vector<16x128xf32>
    %187 = arith.subf %179, %186 : vector<16x128xf32>
    %188 = arith.mulf %187, %187 : vector<16x128xf32>
    %cst_51 = arith.constant dense<0.000000e+00> : vector<16xf32>
    %189 = vector.multi_reduction <add>, %188, %cst_51 [1] : vector<16x128xf32> to vector<16xf32>
    %190 = vector.shape_cast %189 : vector<16xf32> to vector<16x1xf32>
    %cst_52 = arith.constant 1.280000e+02 : f32
    %191 = vector.broadcast %cst_52 : f32 to vector<16x1xf32>
    %192 = arith.divf %190, %191 : vector<16x1xf32>
    %193 = vector.broadcast %185 : vector<16x1xf32> to vector<16x128xf32>
    %194 = arith.subf %179, %193 : vector<16x128xf32>
    %cst_53 = arith.constant 9.99999974E-6 : f32
    %195 = vector.broadcast %cst_53 : f32 to vector<16x1xf32>
    %196 = arith.addf %192, %195 : vector<16x1xf32>
    %197 = math.rsqrt %196 : vector<16x1xf32>
    %198 = vector.broadcast %197 : vector<16x1xf32> to vector<16x128xf32>
    %199 = arith.mulf %194, %198 : vector<16x128xf32>
    %200 = vector.broadcast %180 : vector<1x128xf32> to vector<16x128xf32>
    %201 = arith.mulf %199, %200 : vector<16x128xf32>
    %202 = vector.broadcast %181 : vector<1x128xf32> to vector<16x128xf32>
    %203 = arith.addf %201, %202 : vector<16x128xf32>
    %204 = arith.addf %152, %203 : vector<16x128xf32>
    %205 = arith.addf %152, %204 : vector<16x128xf32>
    %206 = vector.extract_strided_slice %3 {offsets = [7, 0], sizes = [1, 128], strides = [1, 1]} : vector<9x128xf32> to vector<1x128xf32>
    %207 = vector.extract_strided_slice %3 {offsets = [8, 0], sizes = [1, 128], strides = [1, 1]} : vector<9x128xf32> to vector<1x128xf32>
    %cst_54 = arith.constant dense<0.000000e+00> : vector<16xf32>
    %208 = vector.multi_reduction <add>, %205, %cst_54 [1] : vector<16x128xf32> to vector<16xf32>
    %209 = vector.shape_cast %208 : vector<16xf32> to vector<16x1xf32>
    %cst_55 = arith.constant 1.280000e+02 : f32
    %210 = vector.broadcast %cst_55 : f32 to vector<16x1xf32>
    %211 = arith.divf %209, %210 : vector<16x1xf32>
    %212 = vector.broadcast %211 : vector<16x1xf32> to vector<16x128xf32>
    %213 = arith.subf %205, %212 : vector<16x128xf32>
    %214 = arith.mulf %213, %213 : vector<16x128xf32>
    %cst_56 = arith.constant dense<0.000000e+00> : vector<16xf32>
    %215 = vector.multi_reduction <add>, %214, %cst_56 [1] : vector<16x128xf32> to vector<16xf32>
    %216 = vector.shape_cast %215 : vector<16xf32> to vector<16x1xf32>
    %cst_57 = arith.constant 1.280000e+02 : f32
    %217 = vector.broadcast %cst_57 : f32 to vector<16x1xf32>
    %218 = arith.divf %216, %217 : vector<16x1xf32>
    %219 = vector.broadcast %211 : vector<16x1xf32> to vector<16x128xf32>
    %220 = arith.subf %205, %219 : vector<16x128xf32>
    %cst_58 = arith.constant 9.99999974E-6 : f32
    %221 = vector.broadcast %cst_58 : f32 to vector<16x1xf32>
    %222 = arith.addf %218, %221 : vector<16x1xf32>
    %223 = math.rsqrt %222 : vector<16x1xf32>
    %224 = vector.broadcast %223 : vector<16x1xf32> to vector<16x128xf32>
    %225 = arith.mulf %220, %224 : vector<16x128xf32>
    %226 = vector.broadcast %206 : vector<1x128xf32> to vector<16x128xf32>
    %227 = arith.mulf %225, %226 : vector<16x128xf32>
    %228 = vector.broadcast %207 : vector<1x128xf32> to vector<16x128xf32>
    %229 = arith.addf %227, %228 : vector<16x128xf32>
    %c0_59 = arith.constant 0 : index
    %c0_60 = arith.constant 0 : index
    %230 = vector.load %arg7[%c0_59, %c0_60] : memref<16x128xf32, #tpu.memory_space<vmem>>, vector<16x128xf32>
    tpu.vector_store %arg7[%c0_59, %c0_60], %229 {strides = array<i32>} : memref<16x128xf32, #tpu.memory_space<vmem>>, vector<16x128xf32>,
    return
  }
  func.func @transform_0(%arg0: i32) -> (i32, i32) {
    %c0_i32 = arith.constant 0 : i32
    %c0_i32_0 = arith.constant 0 : i32
    return %arg0, %c0_i32 : i32, i32
  }
  func.func @transform_1(%arg0: i32) -> (i32, i32, i32) {
    %c0_i32 = arith.constant 0 : i32
    %c0_i32_0 = arith.constant 0 : i32
    %c0_i32_1 = arith.constant 0 : i32
    return %arg0, %c0_i32, %c0_i32_0 : i32, i32, i32
  }
  func.func @transform_2(%arg0: i32) -> (i32, i32) {
    %c0_i32 = arith.constant 0 : i32
    %c0_i32_0 = arith.constant 0 : i32
    %c0_i32_1 = arith.constant 0 : i32
    return %c0_i32, %c0_i32_0 : i32, i32
  }
  func.func @transform_3(%arg0: i32) -> (i32, i32) {
    %c0_i32 = arith.constant 0 : i32
    %c0_i32_0 = arith.constant 0 : i32
    %c0_i32_1 = arith.constant 0 : i32
    return %c0_i32, %c0_i32_0 : i32, i32
  }
  func.func @transform_4(%arg0: i32) -> (i32, i32, i32) {
    %c0_i32 = arith.constant 0 : i32
    %c0_i32_0 = arith.constant 0 : i32
    %c0_i32_1 = arith.constant 0 : i32
    %c0_i32_2 = arith.constant 0 : i32
    return %c0_i32, %c0_i32_0, %c0_i32_1 : i32, i32, i32
  }
  func.func @transform_5(%arg0: i32) -> (i32, i32) {
    %c0_i32 = arith.constant 0 : i32
    %c0_i32_0 = arith.constant 0 : i32
    %c0_i32_1 = arith.constant 0 : i32
    return %c0_i32, %c0_i32_0 : i32, i32
  }
  func.func @transform_6(%arg0: i32) -> (i32, i32) {
    %c0_i32 = arith.constant 0 : i32
    %c0_i32_0 = arith.constant 0 : i32
    return %arg0, %c0_i32 : i32, i32
  }
}

</mosaic_0001>

<bundles_post_ra>
// kernel: tpu_custom_call.1
= control target key start
LH: loop header
LB: loop body
LE: loop exit
PB: predicated region body
PF: predicated region fallthrough
CT: control target
= control target key end

     0   :  { %11 = vsyncpa [#allocation3], 0  ;;  %s2826_s0 = inlined_call_operand.hbm [shape: f32[16,128], index: 0, kind: input, shape index: {}]   ;;  %s2827_s1 = inlined_call_operand.hbm [shape: bf16[2,8,8], index: 1, kind: input, shape index: {}]   ;;  %s2828_s2 = inlined_call_operand.hbm [shape: bf16[128,384], index: 2, kind: input, shape index: {}]   ;;  %s2829_s3 = inlined_call_operand.vmem [shape: f32[1,384], index: 3, kind: input, shape index: {}]   ;;  %s2830_s4 = inlined_call_operand.hbm [shape: bf16[3,128,128], index: 4, kind: input, shape index: {}]   ;;  %s2831_s5 = inlined_call_operand.hbm [shape: f32[9,128], index: 5, kind: input, shape index: {}]   ;;  %s2832_s6 = inlined_call_operand.hbm [shape: f32[16,128], index: 6, kind: output, shape index: {}]  }
   0x1   :  { %12 = vsyncpa [#allocation6], 0 }
   0x2   :  { %13 = vsyncpa [#allocation9], 0 }
   0x3   :  { %14 = vsyncpa [#allocation4], 0  ;;  %s2451_s21 = smov [#allocation5]  }
   0x4   :  { %s32_s22 = sshll.u32 %s2451_s21, 4  ;;  %s33_s22 = int_to_ptr.vmem [resolvable:$true] %s32_s22 }
   0x5   :  { %s2331_s23 = scalar_lea.vmem %s33_s22, 128  ;;  %p2336_p1 = scmp.lt.s32.totalorder %s33_s22, %s33_s22 }
   0x6   :  { %p2332_p0 = scmp.ne.s32.totalorder %s33_s22, %s2331_s23  ;;  %p2337_p2 = scmp.lt.s32.totalorder %s2331_s23, %s2331_s23 }
   0x8   :  { %p2338_p3 = por %p2337_p2, %p2336_p1 }
   0xa   :  { %p2339_p4 = pnand %p2338_p3, %p2332_p0 }
   0xc   :  { %2342 = shalt.err (!%p2339_p4)
}
   0xd   :  { %s2452_s24 = smov 64   ;;  %s2453_s25 = smov 4  }
   0xe   :  { %38 = dma.hbm_to_vmem [thread:$0]  %s2827_s1, 128, %s33_s22, [#allocation6], %s2452_s24, %s2452_s24, %s2453_s25  }
   0xf   :  { %s2454_s28 = smov [#allocation8]   ;;  %s2455_s30 = smov [#allocation2]  }
  0x10   :  { %s58_s29 = sshll.u32 %s2454_s28, 4  ;;  %s20_s7 = sshll.u32 %s2455_s30, 4  ;;  %s59_s29 = int_to_ptr.vmem [resolvable:$true] %s58_s29  ;;  %s21_s7 = int_to_ptr.vmem [resolvable:$true] %s20_s7 }
  0x11   :  { %s2351_s8 = scalar_lea.vmem %s59_s29, 3072  ;;  %p2356_p6 = scmp.lt.s32.totalorder %s59_s29, %s59_s29 }
  0x12   :  { %p2352_p5 = scmp.ne.s32.totalorder %s59_s29, %s2351_s8  ;;  %p2357_p7 = scmp.lt.s32.totalorder %s2351_s8, %s2351_s8 }
  0x14   :  { %p2358_p8 = por %p2357_p7, %p2356_p6 }
  0x16   :  { %p2359_p9 = pnand %p2358_p8, %p2352_p5 }
  0x18   :  { %2362 = shalt.err (!%p2359_p9)
}
  0x19   :  { %64 = dma.hbm_to_vmem [thread:$0]  %s2830_s4, 3072, %s59_s29, [#allocation9], %s2452_s24, %s2452_s24, %s2453_s25  }
  0x1a   :  { %s2371_s1 = scalar_lea.vmem %s21_s7, 256  ;;  %p2376_p11 = scmp.lt.s32.totalorder %s21_s7, %s21_s7 }
  0x1b   :  { %p2372_p10 = scmp.ne.s32.totalorder %s21_s7, %s2371_s1  ;;  %p2377_p12 = scmp.lt.s32.totalorder %s2371_s1, %s2371_s1 }
  0x1d   :  { %p2378_p13 = por %p2377_p12, %p2376_p11 }
  0x1f   :  { %p2379_p0 = pnand %p2378_p13, %p2372_p10 }
  0x21   :  { %2382 = shalt.err (!%p2379_p0)
}
  0x22   :  { %s2456_s11 = smov 128   ;;  %s2457_s12 = smov 8  }
  0x23   :  { %26 = dma.hbm_to_vmem [thread:$0]  %s2826_s0, 256, %s21_s7, [#allocation3], %s2456_s11, %s2456_s11, %s2457_s12  }
  0x24   :  { %s2458_s15 = smov [#allocation7]  }
  0x25   :  { %s44_s16 = sshll.u32 %s2458_s15, 4  ;;  %s45_s16 = int_to_ptr.vmem [resolvable:$true] %s44_s16 }
  0x26   :  { %s2391_s4 = scalar_lea.vmem %s45_s16, 3072  ;;  %p2396_p2 = scmp.lt.s32.totalorder %s45_s16, %s45_s16 }
  0x27   :  { %p2392_p1 = scmp.ne.s32.totalorder %s45_s16, %s2391_s4  ;;  %p2397_p3 = scmp.lt.s32.totalorder %s2391_s4, %s2391_s4 }
  0x29   :  { %p2398_p4 = por %p2397_p3, %p2396_p2 }
  0x2b   :  { %p2399_p5 = pnand %p2398_p4, %p2392_p1 }
  0x2d   :  { %2402 = shalt.err (!%p2399_p5)
}
  0x2e   :  { %s2459_s17 = smov 192   ;;  %s2460_s18 = smov 12  }
  0x2f   :  { %50 = dma.hbm_to_vmem [thread:$0]  %s2828_s2, 3072, %s45_s16, [#allocation6], %s2459_s17, %s2459_s17, %s2460_s18  }
  0x30   :  { %s2461_s21 = smov [#allocation10]  }
  0x31   :  { %s70_s22 = sshll.u32 %s2461_s21, 4  ;;  %s71_s22 = int_to_ptr.vmem [resolvable:$true] %s70_s22 }
  0x32   :  { %s2411_s0 = scalar_lea.vmem %s71_s22, 256  ;;  %p2416_p7 = scmp.lt.s32.totalorder %s71_s22, %s71_s22 }
  0x33   :  { %p2412_p6 = scmp.ne.s32.totalorder %s71_s22, %s2411_s0  ;;  %p2417_p8 = scmp.lt.s32.totalorder %s2411_s0, %s2411_s0 }
  0x35   :  { %p2418_p9 = por %p2417_p8, %p2416_p7 }
  0x37   :  { %p2419_p10 = pnand %p2418_p9, %p2412_p6 }
  0x39   :  { %2422 = shalt.err (!%p2419_p10)
}
  0x3a   :  { %76 = dma.hbm_to_vmem [thread:$0]  %s2831_s5, 256, %s71_s22, [#allocation9], %s2456_s11, %s2456_s11, %s2457_s12  }
  0x3b   :  { %2443 = dma.done.wait [#allocation3], 256  }
  0x3c   :  { %2444 = vsyncadd [#allocation3], 4294967040 }
  0x3d   :  { %2445 = dma.done.wait [#allocation6], 3200  }
  0x3e   :  { %2446 = vsyncadd [#allocation6], 4294964096 }
  0x3f   :  { %2447 = dma.done.wait [#allocation9], 3328  }
  0x40   :  { %2448 = vsyncadd [#allocation9], 4294963968  ;;  %v2462_v0 = vmov 0   ;;  %v2463_v1 = vmov 0.0   ;;  %v2219_v2 = vld [vmem:[#allocation7 + $0xac] ss:$12 sps:$4 sm:$0xff]   ;;  %v136_v29 = vlaneseq }
  0x41   :  { %311 = vmatprep.mubr.bf16.mxu0 %v2462_v0  ;;  %2014 = vmatprep.subr.bf16.mxu1 %v2463_v1  ;;  %v2221_v3 = vld [vmem:[#allocation7 + $0xa8] ss:$12 sps:$4 sm:$0xff]   ;;  %v2224_v5 = vld [vmem:[#allocation7 + $0x90] ss:$12 sps:$4 sm:$0xff]   ;;  %v2227_v7 = vld [vmem:[#allocation7 + $0x78] ss:$12 sps:$4 sm:$0xff]  }
  0x42   :  { %279 = vmatprep.subr.bf16.mxu0 %v2219_v2  ;;  %v2222_v4 = vld [vmem:[#allocation7 + $0x94] ss:$12 sps:$4 sm:$0xff]   ;;  %v2225_v6 = vld [vmem:[#allocation7 + $0x7c] ss:$12 sps:$4 sm:$0xff]   ;;  %v2228_v8 = vld [vmem:[#allocation7 + $0x64] ss:$12 sps:$4 sm:$0xff]  }
  0x43   :  { %280 = vmatpush1.bf16.msra.mxu0 %v2221_v3  ;;  %v2230_v9 = vld [vmem:[#allocation7 + $0x60] ss:$12 sps:$4 sm:$0xff]   ;;  %v2243_v11 = vld [vmem:[#allocation7 + $0xb0] ss:$12 sps:$4 sm:$0xff]   ;;  %v2244_v12 = vld [vmem:[#allocation7 + $0x98] ss:$12 sps:$4 sm:$0xff]  }
  0x44   :  { %281 = vmatprep.subr.bf16.mxu0 %v2222_v4  ;;  %v2231_v10 = vld [vmem:[#allocation7 + $0x4c] ss:$12 sps:$4 sm:$0xff]   ;;  %2015 = vmatpush3.bf16.msra.mxu1 %v2243_v11  ;;  %v2233_v13 = vld [vmem:[#allocation7 + $0x48] ss:$12 sps:$4 sm:$0xff]   ;;  %v2236_v15 = vld [vmem:[#allocation7 + $0x30] ss:$12 sps:$4 sm:$0xff]  }
  0x45   :  { %2016 = vmatprep.subr.bf16.mxu1 %v2463_v1  ;;  %v2234_v14 = vld [vmem:[#allocation7 + $0x34] ss:$12 sps:$4 sm:$0xff]   ;;  %v2237_v16 = vld [vmem:[#allocation7 + $0x1c] ss:$12 sps:$4 sm:$0xff]   ;;  %v2239_v19 = vld [vmem:[#allocation7 + $0x18] ss:$12 sps:$4 sm:$0xff]  }
  0x46   :  { %v2245_v17 = vld [vmem:[#allocation7 + $0x80] ss:$12 sps:$4 sm:$0xff]   ;;  %v2246_v18 = vld [vmem:[#allocation7 + $0x68] ss:$12 sps:$4 sm:$0xff]   ;;  %v2240_v20 = vld [vmem:[#allocation7 + $0x4] ss:$12 sps:$4 sm:$0xff]  }
  0x47   :  { %282 = vmatpush1.bf16.msra.mxu0 %v2224_v5  ;;  %v2247_v21 = vld [vmem:[#allocation7 + $0x50] ss:$12 sps:$4 sm:$0xff]   ;;  %v2242_v22 = vld [vmem:[#allocation7] ss:$12 sps:$4 sm:$0xff]   ;;  %v2248_v25 = vld [vmem:[#allocation7 + $0x38] ss:$12 sps:$4 sm:$0xff]  }
  0x48   :  { %283 = vmatprep.subr.bf16.mxu0 %v2225_v6  ;;  %2017 = vmatpush3.bf16.msra.mxu1 %v2244_v12  ;;  %v2532_v23 = vld [vmem:[#allocation2] sm:$0xff]  ;;  %v2534_v24 = vld [vmem:[#allocation2 + $0x8] sm:$0xff]  ;;  %vm2464_vm0 = vmmov 0   ;;  %v2550_v30 = vshrl.u32 %v136_v29, 7  ;;  %vm385_vm1 = vcmask 261120   ;;  %vm506_vm2 = vcmask 1043456  }
  0x49   :  { %2018 = vmatprep.subr.bf16.mxu1 %v2463_v1  ;;  %v133_v26 = vpack.c.bf16 %v2534_v24, %v2532_v23  ;;  %v2249_v27 = vld [vmem:[#allocation7 + $0x20] ss:$12 sps:$4 sm:$0xff]   ;;  %v2250_v28 = vld [vmem:[#allocation7 + $0x8] ss:$12 sps:$4 sm:$0xff]   ;;  %2030 = vmatprep.mubr.msk.bf16.mxu1 %vm2464_vm0, %v2463_v1  ;;  %v1940_v62 = vld [vmem:[#allocation5] sm:$0xff]   ;;  %vm478_vm3 = vcmask 64512  }
  0x4a   :  { %v142_v31 = vsub.s32 1, %v2550_v30  ;;  %v134_v32 = vld [vmem:[%s2829_s3] sm:$0x7]  ;;  %v138_v35 = vsub.s32 0, %v2550_v30  ;;  %s2465_s3 = smov 96   ;;  %v146_v50 = vsub.s32 2, %v2550_v30  ;;  %v2598_v63 = vunpack.c.l.bf16 %v1940_v62 }
  0x4b   :  { %284 = vmatpush1.bf16.msra.mxu0 %v2227_v7  ;;  %v2601_v3 = vunpack.c.h.bf16 %v1940_v62  ;;  %s2466_s26 = smov 32  }
  0x4c   :  { %285 = vmatprep.subr.bf16.mxu0 %v2228_v8  ;;  %2019 = vmatpush3.bf16.msra.mxu1 %v2245_v17  ;;  %v143_v33 = vrot.slane %v134_v32, %v142_v31  ;;  %v139_v39 = vrot.slane %v134_v32, %v138_v35  ;;  %v147_v51 = vrot.slane %v134_v32, %v146_v50 }
  0x4d   :  { %2020 = vmatprep.subr.bf16.mxu1 %v2463_v1 }
  0x4f   :  { %286 = vmatpush1.bf16.msra.mxu0 %v2230_v9 }
  0x50   :  { %287 = vmatprep.subr.bf16.mxu0 %v2231_v10  ;;  %2021 = vmatpush3.bf16.msra.mxu1 %v2246_v18 }
  0x51   :  { %2022 = vmatprep.subr.bf16.mxu1 %v2463_v1 }
  0x53   :  { %288 = vmatpush1.bf16.msra.mxu0 %v2233_v13 }
  0x54   :  { %289 = vmatprep.subr.bf16.mxu0 %v2234_v14  ;;  %2023 = vmatpush3.bf16.msra.mxu1 %v2247_v21 }
  0x55   :  { %2024 = vmatprep.subr.bf16.mxu1 %v2463_v1 }
  0x57   :  { %290 = vmatpush1.bf16.msra.mxu0 %v2236_v15 }
  0x58   :  { %291 = vmatprep.subr.bf16.mxu0 %v2237_v16  ;;  %2025 = vmatpush3.bf16.msra.mxu1 %v2248_v25 }
  0x59   :  { %2026 = vmatprep.subr.bf16.mxu1 %v2463_v1 }
  0x5b   :  { %292 = vmatpush1.bf16.msra.mxu0 %v2239_v19 }
  0x5c   :  { %293 = vmatprep.subr.bf16.mxu0 %v2240_v20  ;;  %2027 = vmatpush3.bf16.msra.mxu1 %v2249_v27 }
  0x5d   :  { %2028 = vmatprep.subr.bf16.mxu1 %v2463_v1 }
  0x5f   :  { %294 = vmatpush1.bf16.msra.mxu0 %v2242_v22 }
  0x60   :  { %2034 = vmatprep.subr.bf16.mxu0 %v2463_v1  ;;  %2029 = vmatpush3.bf16.msra.mxu1 %v2250_v28 }
  0x61   :  { %2040 = vmatprep.subr.bf16.mxu1 %v2463_v1 }
  0x62   :  { %312 = vmatmul.mubr.bf16.vlgmr.msra.gmra.mxu0 %v133_v26 }
  0x63   :  { %2036 = vmatprep.mubr.msk.bf16.mxu0 %vm2464_vm0, %v2463_v1  ;;  %2031 = vmatmul.mubr.bf16.vlgmr.msra.gmra.mxu1 %v133_v26 }
  0x64   :  { %2042 = vmatprep.mubr.msk.bf16.mxu1 %vm2464_vm0, %v2463_v1 }
 0x122   :  { %v313_v34 = vpop.f32.mrf.mxu0 }
 0x123   :  { %v314_v44 = vadd.f32 %v313_v34, %v139_v39  ;;  %v356_v52 = vpop.f32.mrf.mxu1 }
 0x124   :  { %v315_v36 = vpop.f32.mrf.mxu0  ;;  %v357_v54 = vadd.f32 %v356_v52, %v147_v51 }
 0x125   :  { %v316_v37 = vadd.f32 %v315_v36, %v143_v33  ;;  %v2572_v47 = vpack.c.bf16 %v314_v44, %v314_v44  ;;  %v2032_v53 = vpop.f32.mrf.mxu1 }
 0x126   :  { %v317_v38 = vpop.f32.mrf.mxu0  ;;  %v2588_v58 = vpack.c.bf16 %v357_v54, %v357_v54 }
 0x127   :  { %v2561_v40 = vpack.c.bf16 %v316_v37, %v316_v37  ;;  %v318_v48 = vadd.f32 %v317_v38, %v139_v39  ;;  %v359_v55 = vpop.f32.mrf.mxu1 }
 0x128   :  { %v319_v41 = vpop.f32.mrf.mxu0  ;;  %v360_v56 = vadd.f32 %v359_v55, %v147_v51  ;;  %v508_v60 = vsel %vm506_vm2, %v2588_v58, 0 }
 0x129   :  { %v320_v42 = vadd.f32 %v319_v41, %v143_v33  ;;  %v390_v43 = vsel %vm385_vm1, %v2561_v40, 0  ;;  %v2579_v49 = vpack.c.bf16 %v318_v48, %v318_v48  ;;  %v2033_v57 = vpop.f32.mrf.mxu1 }
 0x12a   :  { %2035 = vmatpush3.bf16.xpose.msra.mxu0 %v390_v43  ;;  %v2590_v59 = vpack.c.bf16 %v360_v56, %v360_v56 }
 0x12b   :  { %v2565_v45 = vpack.c.bf16 %v320_v42, %v320_v42  ;;  %2046 = vmatprep.subr.bf16.mxu0 %v2463_v1 }
 0x12c   :  { %v554_v61 = vsel %vm506_vm2, %v2590_v59, 0 }
 0x12d   :  { %653 = vrot.lane.b32.xlu1 %v2565_v45, %s2465_s3  ;;  %v436_v46 = vsel %vm385_vm1, %v2565_v45, 0 }
 0x12e   :  { %2041 = vmatpush3.bf16.xpose.msra.mxu1 %v436_v46 }
 0x12f   :  { %2052 = vmatprep.subr.bf16.mxu1 %v2463_v1 }
 0x131   :  { %2037 = vmatmul.mubr.msk.bf16.vlgmr.msra.gmra.mxu0 %vm385_vm1, %v2572_v47 }
 0x132   :  { %2048 = vmatprep.mubr.msk.bf16.mxu0 %vm2464_vm0, %v2463_v1  ;;  %2047 = vmatpush3.bf16.msra.mxu0 %v508_v60 }
 0x133   :  { %2058 = vmatprep.subr.bf16.mxu0 %v2463_v1 }
 0x135   :  { %2043 = vmatmul.mubr.msk.bf16.vlgmr.msra.gmra.mxu1 %vm385_vm1, %v2579_v49 }
 0x136   :  { %2054 = vmatprep.mubr.msk.bf16.mxu1 %vm2464_vm0, %v2463_v1  ;;  %2053 = vmatpush3.bf16.msra.mxu1 %v554_v61 }
 0x137   :  { %2064 = vmatprep.subr.bf16.mxu1 %v2463_v1 }
 0x19f   :  { %v654_v26 = vpop.permute.xlu1 %653 }
 0x1a0   :  { %v659_v41 = vsel %vm385_vm1, %v654_v26, 0 }
 0x1f1   :  { %v426_v0 = vpop.f32.mrf.mxu0 }
 0x1f2   :  { %v427_v2 = vadd.f32 %v2598_v63, %v426_v0 }
 0x1f3   :  { %v2038_v4 = vpop.f32.mrf.mxu0 }
 0x1f4   :  { %v479_v5 = vsel %vm478_vm3, %v427_v2, -inf }
 0x1f5   :  { %v472_v6 = vpop.f32.mrf.mxu1  ;;  %480 = vmax.xlane.f32.xlu0 %v479_v5  ;;  %v429_v7 = vpop.f32.mrf.mxu0 }
 0x1f6   :  { %v473_v8 = vadd.f32 %v2601_v3, %v472_v6 }
 0x1f7   :  { %v2039_v9 = vpop.f32.mrf.mxu0  ;;  %v2044_v10 = vpop.f32.mrf.mxu1 }
 0x1f8   :  { %v482_v11 = vsel %vm478_vm3, %v473_v8, -inf }
 0x1f9   :  { %v475_v12 = vpop.f32.mrf.mxu1  ;;  %483 = vmax.xlane.f32.xlu0 %v482_v11 }
 0x1fb   :  { %v2045_v13 = vpop.f32.mrf.mxu1 }
 0x20f   :  { %601 = vrot.lane.b32.xlu0 %v2561_v40, %s2465_s3 }
 0x27e   :  { %v481_v14 = vpop.xlane.xlu0 %480 }
 0x27f   :  { %v485_v15 = vsub.f32 %v427_v2, %v481_v14 }
 0x281   :  { %v487_v16 = vmul.f32 1.442695, %v485_v15 }
 0x282   :  { %v484_v17 = vpop.xlane.xlu0 %483 }
 0x283   :  { %2275 = vpow2.f32 %v487_v16  ;;  %v486_v18 = vsub.f32 %v473_v8, %v484_v17 }
 0x285   :  { %v489_v19 = vmul.f32 1.442695, %v486_v18 }
 0x286   :  { %v602_v33 = vpop.permute.xlu0 %601 }
 0x287   :  { %2277 = vpow2.f32 %v489_v19  ;;  %v607_v37 = vsel %vm385_vm1, %v602_v33, 0 }
 0x290   :  { %v2276_v20 = vpop.eup %2275 }
 0x291   :  { %v491_v21 = vsel %vm478_vm3, %v2276_v20, 0.0 }
 0x292   :  { %492 = vadd.xlane.f32.xlu1 %v491_v21 }
 0x294   :  { %v2278_v22 = vpop.eup %2277 }
 0x295   :  { %v494_v25 = vsel %vm478_vm3, %v2278_v22, 0.0 }
 0x296   :  { %495 = vadd.xlane.f32.xlu1 %v494_v25 }
 0x2a7   :  { %598 = vrot.lane.b32.xlu1 %v2572_v47, %s2465_s3 }
 0x2ab   :  { %650 = vrot.lane.b32.xlu1 %v2579_v49, %s2465_s3 }
 0x31b   :  { %v493_v27 = vpop.xlane.xlu1 %492 }
 0x31c   :  { %2279 = vrcp.f32 %v493_v27 }
 0x31f   :  { %v496_v28 = vpop.xlane.xlu1 %495 }
 0x320   :  { %2281 = vrcp.f32 %v496_v28 }
 0x323   :  { %v599_v42 = vpop.permute.xlu1 %598 }
 0x327   :  { %v651_v43 = vpop.permute.xlu1 %650 }
 0x329   :  { %v2280_v29 = vpop.eup %2279 }
 0x32a   :  { %v499_v32 = vmul.f32 %v2280_v29, %v2276_v20 }
 0x32c   :  { %v501_v34 = vpack.c.bf16 %v499_v32, %v499_v32  ;;  %v2253_v32 = vld [vmem:[#allocation8 + $0x18] sm:$0xff]  }
 0x32d   :  { %v2282_v36 = vpop.eup %2281 }
 0x32e   :  { %2049 = vmatmul.mubr.msk.bf16.vlgmr.msra.gmra.mxu0 %vm478_vm3, %v501_v34  ;;  %v500_v38 = vmul.f32 %v2282_v36, %v2278_v22 }
 0x32f   :  { %2059 = vmatpush3.bf16.xpose.msra.mxu0 %v607_v37  ;;  %2060 = vmatprep.mubr.msk.bf16.mxu0 %vm2464_vm0, %v2463_v1  ;;  %v2251_v37 = vld [vmem:[#allocation8 + $0x8] sm:$0xff]  }
 0x330   :  { %v502_v39 = vpack.c.bf16 %v500_v38, %v500_v38  ;;  %2070 = vmatprep.subr.bf16.mxu0 %v2463_v1 }
 0x332   :  { %2055 = vmatmul.mubr.msk.bf16.vlgmr.msra.gmra.mxu1 %vm478_vm3, %v502_v39 }
 0x333   :  { %2065 = vmatpush3.bf16.xpose.msra.mxu1 %v659_v41  ;;  %2066 = vmatprep.mubr.msk.bf16.mxu1 %vm2464_vm0, %v2463_v1  ;;  %v2252_v41 = vld [vmem:[#allocation8] sm:$0xff]  }
 0x334   :  { %2076 = vmatprep.subr.bf16.mxu1 %v2463_v1 }
 0x336   :  { %2061 = vmatmul.mubr.msk.bf16.vlgmr.msra.gmra.mxu0 %vm385_vm1, %v599_v42 }
 0x337   :  { %2072 = vmatprep.mubr.msk.bf16.mxu0 %vm2464_vm0, %v2463_v1 }
 0x33a   :  { %2067 = vmatmul.mubr.msk.bf16.vlgmr.msra.gmra.mxu1 %vm385_vm1, %v651_v43 }
 0x33b   :  { %2078 = vmatprep.mubr.msk.bf16.mxu1 %vm2464_vm0, %v2463_v1 }
 0x3ee   :  { %v2630_v44 = vpop.f32.mrf.mxu0 }
 0x3f0   :  { %v2050_v46 = vpop.f32.mrf.mxu0 }
 0x3f2   :  { %v547_v48 = vpop.f32.mrf.mxu0  ;;  %v2632_v51 = vpop.f32.mrf.mxu1 }
 0x3f3   :  { %v596_v52 = vpack.c.bf16 %v2632_v51, %v2630_v44  ;;  %v2254_v48 = vld [vmem:[#allocation8 + $0x10] sm:$0xff]  }
 0x3f4   :  { %v2051_v53 = vpop.f32.mrf.mxu0  ;;  %v2056_v54 = vpop.f32.mrf.mxu1 }
 0x3f6   :  { %v593_v55 = vpop.f32.mrf.mxu1  ;;  %v643_v56 = vpop.f32.mrf.mxu0 }
 0x3f7   :  { %v644_v57 = vadd.f32 %v2598_v63, %v643_v56 }
 0x3f8   :  { %v2057_v60 = vpop.f32.mrf.mxu1  ;;  %v2062_v61 = vpop.f32.mrf.mxu0 }
 0x3f9   :  { %v701_v62 = vsel %vm478_vm3, %v644_v57, -inf }
 0x3fa   :  { %v695_v0 = vpop.f32.mrf.mxu1  ;;  %702 = vmax.xlane.f32.xlu0 %v701_v62  ;;  %v646_v2 = vpop.f32.mrf.mxu0 }
 0x3fb   :  { %v696_v4 = vadd.f32 %v2601_v3, %v695_v0 }
 0x3fc   :  { %v2063_v5 = vpop.f32.mrf.mxu0  ;;  %v2068_v6 = vpop.f32.mrf.mxu1 }
 0x3fd   :  { %v704_v7 = vsel %vm478_vm3, %v696_v4, -inf }
 0x3fe   :  { %705 = vmax.xlane.f32.xlu1 %v704_v7  ;;  %v698_v8 = vpop.f32.mrf.mxu1 }
 0x400   :  { %v2069_v9 = vpop.f32.mrf.mxu1 }
 0x40f   :  { %775 = vrot.lane.b32.xlu1 %v2590_v59, %s2465_s3 }
 0x413   :  { %938 = vrot.lane.b32.xlu1 %v2561_v40, %s2452_s24 }
 0x417   :  { %988 = vrot.lane.b32.xlu1 %v2565_v45, %s2452_s24 }
 0x41b   :  { %986 = vrot.lane.b32.xlu1 %v2579_v49, %s2452_s24 }
 0x483   :  { %v703_v10 = vpop.xlane.xlu0 %702 }
 0x484   :  { %v707_v11 = vsub.f32 %v644_v57, %v703_v10 }
 0x486   :  { %v709_v12 = vmul.f32 1.442695, %v707_v11 }
 0x487   :  { %v706_v13 = vpop.xlane.xlu1 %705 }
 0x488   :  { %2283 = vpow2.f32 %v709_v12  ;;  %v708_v14 = vsub.f32 %v696_v4, %v706_v13 }
 0x48a   :  { %v711_v15 = vmul.f32 1.442695, %v708_v14 }
 0x48b   :  { %v776_v16 = vpop.permute.xlu1 %775 }
 0x48c   :  { %2285 = vpow2.f32 %v711_v15  ;;  %v781_v17 = vsel %vm506_vm2, %v776_v16, 0 }
 0x48d   :  { %2077 = vmatpush3.bf16.msra.mxu1 %v781_v17 }
 0x48e   :  { %2090 = vmatprep.subr.bf16.mxu1 %v2463_v1 }
 0x48f   :  { %v939_v39 = vpop.permute.xlu1 %938 }
 0x490   :  { %v944_v57 = vsel %vm385_vm1, %v939_v39, 0 }
 0x493   :  { %v989_v42 = vpop.permute.xlu1 %988 }
 0x494   :  { %v994_v43 = vsel %vm385_vm1, %v989_v42, 0 }
 0x495   :  { %v2284_v18 = vpop.eup %2283 }
 0x496   :  { %v713_v19 = vsel %vm478_vm3, %v2284_v18, 0.0 }
 0x497   :  { %714 = vadd.xlane.f32.xlu0 %v713_v19  ;;  %v987_v46 = vpop.permute.xlu1 %986 }
 0x499   :  { %v2286_v20 = vpop.eup %2285 }
 0x49a   :  { %v716_v21 = vsel %vm478_vm3, %v2286_v20, 0.0 }
 0x49b   :  { %717 = vadd.xlane.f32.xlu0 %v716_v21 }
 0x4b1   :  { %726 = vrot.lane.b32.xlu0 %v2588_v58, %s2465_s3 }
 0x4b5   :  { %936 = vrot.lane.b32.xlu0 %v2572_v47, %s2452_s24 }
 0x520   :  { %v715_v22 = vpop.xlane.xlu0 %714 }
 0x521   :  { %2287 = vrcp.f32 %v715_v22 }
 0x524   :  { %v718_v25 = vpop.xlane.xlu0 %717 }
 0x525   :  { %2289 = vrcp.f32 %v718_v25 }
 0x528   :  { %v727_v26 = vpop.permute.xlu0 %726 }
 0x529   :  { %v732_v27 = vsel %vm506_vm2, %v727_v26, 0 }
 0x52a   :  { %2071 = vmatpush3.bf16.msra.mxu0 %v732_v27 }
 0x52b   :  { %2082 = vmatprep.subr.bf16.mxu0 %v2463_v1 }
 0x52c   :  { %v937_v0 = vpop.permute.xlu0 %936 }
 0x52e   :  { %v2288_v28 = vpop.eup %2287 }
 0x52f   :  { %v721_v29 = vmul.f32 %v2288_v28, %v2284_v18 }
 0x531   :  { %v723_v33 = vpack.c.bf16 %v721_v29, %v721_v29 }
 0x532   :  { %v2290_v34 = vpop.eup %2289 }
 0x533   :  { %2073 = vmatmul.mubr.msk.bf16.vlgmr.msra.gmra.mxu0 %vm478_vm3, %v723_v33  ;;  %v722_v36 = vmul.f32 %v2290_v34, %v2286_v20 }
 0x534   :  { %2083 = vmatpush3.bf16.msra.mxu0 %v2253_v32  ;;  %2086 = vmatprep.mubr.msk.bf16.mxu0 %vm2464_vm0, %v2463_v1 }
 0x535   :  { %v724_v38 = vpack.c.bf16 %v722_v36, %v722_v36  ;;  %2084 = vmatprep.subr.bf16.mxu0 %v2463_v1 }
 0x537   :  { %2079 = vmatmul.mubr.msk.bf16.vlgmr.msra.gmra.mxu1 %vm478_vm3, %v724_v38 }
 0x538   :  { %2091 = vmatpush3.bf16.msra.mxu1 %v2251_v37  ;;  %2094 = vmatprep.mubr.msk.bf16.mxu1 %vm2464_vm0, %v2463_v1 }
 0x539   :  { %2092 = vmatprep.subr.bf16.mxu1 %v2463_v1  ;;  %2085 = vmatpush3.bf16.msra.mxu0 %v2254_v48 }
 0x53a   :  { %2098 = vmatprep.subr.bf16.mxu0 %v2463_v1 }
 0x53c   :  { %2093 = vmatpush3.bf16.msra.mxu1 %v2252_v41 }
 0x53d   :  { %2104 = vmatprep.subr.bf16.mxu1 %v2463_v1 }
 0x53f   :  { %2095 = vmatmul.mubr.msk.bf16.vlgmr.msra.gmra.mxu1 %vm385_vm1, %v596_v52 }
 0x540   :  { %2105 = vmatpush3.bf16.xpose.msra.mxu1 %v994_v43  ;;  %2106 = vmatprep.mubr.msk.bf16.mxu1 %vm2464_vm0, %v2463_v1 }
 0x541   :  { %2116 = vmatprep.subr.bf16.mxu1 %v2463_v1 }
 0x547   :  { %2107 = vmatmul.mubr.msk.bf16.vlgmr.msra.gmra.mxu1 %vm385_vm1, %v987_v46 }
 0x548   :  { %2118 = vmatprep.mubr.msk.bf16.mxu1 %vm2464_vm0, %v2463_v1 }
 0x5f3   :  { %v768_v53 = vpop.f32.mrf.mxu0 }
 0x5f5   :  { %v2074_v44 = vpop.f32.mrf.mxu0 }
 0x5f7   :  { %v771_v51 = vpop.f32.mrf.mxu0  ;;  %v817_v52 = vpop.f32.mrf.mxu1 }
 0x5f8   :  { %v823_v54 = vpack.c.bf16 %v817_v52, %v768_v53 }
 0x5f9   :  { %v2075_v55 = vpop.f32.mrf.mxu0  ;;  %v2080_v56 = vpop.f32.mrf.mxu1 }
 0x5fa   :  { %2087 = vmatmul.mubr.msk.bf16.vlgmr.msra.gmra.mxu0 %vm385_vm1, %v823_v54 }
 0x5fb   :  { %2099 = vmatpush3.bf16.xpose.msra.mxu0 %v944_v57  ;;  %v820_v60 = vpop.f32.mrf.mxu1  ;;  %2100 = vmatprep.mubr.msk.bf16.mxu0 %vm2464_vm0, %v2463_v1  ;;  %v2255_v57 = vld [vmem:[#allocation8 + $0x28] sm:$0xff]  }
 0x5fc   :  { %2110 = vmatprep.subr.bf16.mxu0 %v2463_v1  ;;  %v2256_v60 = vld [vmem:[#allocation8 + $0x20] sm:$0xff]  }
 0x5fd   :  { %v2081_v61 = vpop.f32.mrf.mxu1 }
 0x5ff   :  { %v2684_v62 = vpop.f32.mrf.mxu1 }
 0x601   :  { %v2096_v2 = vpop.f32.mrf.mxu1 }
 0x602   :  { %2101 = vmatmul.mubr.msk.bf16.vlgmr.msra.gmra.mxu0 %vm385_vm1, %v937_v0 }
 0x603   :  { %v2687_v4 = vpop.f32.mrf.mxu1  ;;  %2112 = vmatprep.mubr.msk.bf16.mxu0 %vm2464_vm0, %v2463_v1 }
 0x605   :  { %v2097_v5 = vpop.f32.mrf.mxu1 }
 0x607   :  { %v1030_v6 = vpop.f32.mrf.mxu1 }
 0x608   :  { %v1031_v7 = vadd.f32 %v2601_v3, %v1030_v6 }
 0x609   :  { %v2108_v8 = vpop.f32.mrf.mxu1 }
 0x60a   :  { %v1039_v9 = vsel %vm478_vm3, %v1031_v7, -inf }
 0x60b   :  { %1040 = vmax.xlane.f32.xlu1 %v1039_v9  ;;  %v1033_v10 = vpop.f32.mrf.mxu1 }
 0x60d   :  { %v2109_v11 = vpop.f32.mrf.mxu1 }
 0x61c   :  { %1108 = vrot.lane.b32.xlu1 %v2590_v59, %s2452_s24 }
 0x620   :  { %1217 = vrot.lane.b32.xlu1 %v2561_v40, %s2466_s26 }
 0x624   :  { %1267 = vrot.lane.b32.xlu1 %v2565_v45, %s2466_s26 }
 0x628   :  { %1265 = vrot.lane.b32.xlu1 %v2579_v49, %s2466_s26 }
 0x694   :  { %v1041_v12 = vpop.xlane.xlu1 %1040 }
 0x695   :  { %v1043_v15 = vsub.f32 %v1031_v7, %v1041_v12 }
 0x697   :  { %v1046_v16 = vmul.f32 1.442695, %v1043_v15 }
 0x698   :  { %v1109_v13 = vpop.permute.xlu1 %1108 }
 0x699   :  { %v1114_v14 = vsel %vm506_vm2, %v1109_v13, 0  ;;  %2291 = vpow2.f32 %v1046_v16 }
 0x69a   :  { %2117 = vmatpush3.bf16.msra.mxu1 %v1114_v14 }
 0x69b   :  { %2130 = vmatprep.subr.bf16.mxu1 %v2463_v1 }
 0x69c   :  { %v1218_v39 = vpop.permute.xlu1 %1217 }
 0x69d   :  { %v1223_v42 = vsel %vm385_vm1, %v1218_v39, 0 }
 0x6a0   :  { %v1268_v8 = vpop.permute.xlu1 %1267 }
 0x6a1   :  { %v1273_v12 = vsel %vm385_vm1, %v1268_v8, 0 }
 0x6a4   :  { %v1266_v14 = vpop.permute.xlu1 %1265 }
 0x6a6   :  { %v2292_v22 = vpop.eup %2291 }
 0x6a7   :  { %v1051_v27 = vsel %vm478_vm3, %v2292_v22, 0.0 }
 0x6ba   :  { %v2703_v17 = vpop.f32.mrf.mxu0 }
 0x6bc   :  { %v2088_v18 = vpop.f32.mrf.mxu0 }
 0x6be   :  { %v2705_v40 = vpop.f32.mrf.mxu0 }
 0x6c0   :  { %v2089_v19 = vpop.f32.mrf.mxu0 }
 0x6c2   :  { %v980_v45 = vpop.f32.mrf.mxu0 }
 0x6c3   :  { %v981_v20 = vadd.f32 %v2598_v63, %v980_v45 }
 0x6c4   :  { %v2102_v49 = vpop.f32.mrf.mxu0 }
 0x6c5   :  { %v1036_v21 = vsel %vm478_vm3, %v981_v20, -inf }
 0x6c6   :  { %1037 = vmax.xlane.f32.xlu0 %v1036_v21  ;;  %v983_v25 = vpop.f32.mrf.mxu0 }
 0x6c7   :  { %v933_v25 = vadd.f32 %v2687_v4, %v2705_v40 }
 0x6c8   :  { %v2103_v26 = vpop.f32.mrf.mxu0 }
 0x6ca   :  { %1052 = vadd.xlane.f32.xlu0 %v1051_v27 }
 0x74f   :  { %v1038_v28 = vpop.xlane.xlu0 %1037 }
 0x750   :  { %v1042_v29 = vsub.f32 %v981_v20, %v1038_v28  ;;  %v930_v20 = vadd.f32 %v2684_v62, %v2703_v17 }
 0x752   :  { %v1044_v32 = vmul.f32 1.442695, %v1042_v29 }
 0x753   :  { %v1053_v33 = vpop.xlane.xlu0 %1052 }
 0x754   :  { %2293 = vpow2.f32 %v1044_v32 }
 0x755   :  { %2295 = vrcp.f32 %v1053_v33 }
 0x761   :  { %v2294_v34 = vpop.eup %2293 }
 0x762   :  { %v2296_v36 = vpop.eup %2295  ;;  %v1048_v37 = vsel %vm478_vm3, %v2294_v34, 0.0 }
 0x763   :  { %1049 = vadd.xlane.f32.xlu0 %v1048_v37  ;;  %v1057_v38 = vmul.f32 %v2296_v36, %v2292_v22 }
 0x765   :  { %v1059_v41 = vpack.c.bf16 %v1057_v38, %v1057_v38 }
 0x767   :  { %2119 = vmatmul.mubr.msk.bf16.vlgmr.msra.gmra.mxu1 %vm478_vm3, %v1059_v41 }
 0x768   :  { %2131 = vmatpush3.bf16.xpose.msra.mxu1 %v1223_v42  ;;  %2132 = vmatprep.mubr.msk.bf16.mxu1 %vm2464_vm0, %v2463_v1 }
 0x769   :  { %2142 = vmatprep.subr.bf16.mxu1 %v2463_v1 }
 0x779   :  { %1060 = vrot.lane.b32.xlu0 %v2588_v58, %s2452_s24  ;;  %s2467_s24 = smov [#allocation11]  }
 0x77a   :  { %s1856_s27 = sshll.u32 %s2467_s24, 4  ;;  %s1857_s27 = int_to_ptr.vmem [resolvable:$true] %s1856_s27 }
 0x77b   :  { %s2423_s28 = scalar_lea.vmem %s1857_s27, 256  ;;  %p2428_p12 = scmp.lt.s32.totalorder %s1857_s27, %s1857_s27 }
 0x77c   :  { %p2424_p11 = scmp.ne.s32.totalorder %s1857_s27, %s2423_s28  ;;  %p2429_p13 = scmp.lt.s32.totalorder %s2423_s28, %s2423_s28 }
 0x77d   :  { %1215 = vrot.lane.b32.xlu0 %v2572_v47, %s2466_s26 }
 0x77e   :  { %p2430_p0 = por %p2429_p13, %p2428_p12 }
 0x780   :  { %p2431_p1 = pnand %p2430_p0, %p2424_p11 }
 0x7ec   :  { %v1050_v43 = vpop.xlane.xlu0 %1049 }
 0x7ed   :  { %2297 = vrcp.f32 %v1050_v43 }
 0x7f0   :  { %v1061_v46 = vpop.permute.xlu0 %1060 }
 0x7f1   :  { %v1066_v48 = vsel %vm506_vm2, %v1061_v46, 0 }
 0x7f2   :  { %2111 = vmatpush3.bf16.msra.mxu0 %v1066_v48 }
 0x7f3   :  { %2122 = vmatprep.subr.bf16.mxu0 %v2463_v1 }
 0x7f4   :  { %v1216_v53 = vpop.permute.xlu0 %1215 }
 0x7f5   :  { %2133 = vmatmul.mubr.msk.bf16.vlgmr.msra.gmra.mxu1 %vm385_vm1, %v1216_v53 }
 0x7f6   :  { %2144 = vmatprep.mubr.msk.bf16.mxu1 %vm2464_vm0, %v2463_v1 }
 0x7fa   :  { %v2298_v44 = vpop.eup %2297 }
 0x7fb   :  { %v1056_v51 = vmul.f32 %v2298_v44, %v2294_v34 }
 0x7fd   :  { %v1058_v52 = vpack.c.bf16 %v1056_v51, %v1056_v51 }
 0x7ff   :  { %2113 = vmatmul.mubr.msk.bf16.vlgmr.msra.gmra.mxu0 %vm478_vm3, %v1058_v52  ;;  %v2257_v52 = vld [vmem:[#allocation8 + $0x38] sm:$0xff]  }
 0x800   :  { %2126 = vmatprep.mubr.msk.bf16.mxu0 %vm2464_vm0, %v2463_v1  ;;  %2123 = vmatpush3.bf16.msra.mxu0 %v2255_v57 }
 0x801   :  { %2124 = vmatprep.subr.bf16.mxu0 %v2463_v1 }
 0x804   :  { %2125 = vmatpush3.bf16.msra.mxu0 %v2256_v60 }
 0x805   :  { %2136 = vmatprep.subr.bf16.mxu0 %v2463_v1 }
 0x827   :  { %v1150_v47 = vpop.f32.mrf.mxu1 }
 0x829   :  { %v2120_v54 = vpop.f32.mrf.mxu1 }
 0x82b   :  { %v1153_v55 = vpop.f32.mrf.mxu1 }
 0x82d   :  { %v2121_v56 = vpop.f32.mrf.mxu1 }
 0x8b5   :  { %v1259_v61 = vpop.f32.mrf.mxu1 }
 0x8b6   :  { %v1260_v0 = vadd.f32 %v2598_v63, %v1259_v61 }
 0x8b7   :  { %v2134_v2 = vpop.f32.mrf.mxu1 }
 0x8b8   :  { %v1315_v5 = vsel %vm478_vm3, %v1260_v0, -inf }
 0x8b9   :  { %1316 = vmax.xlane.f32.xlu0 %v1315_v5  ;;  %v1262_v6 = vpop.f32.mrf.mxu1 }
 0x8ba   :  { %v2771_v6 = vld [vmem:[#allocation10] sm:$0xff] }
 0x8bb   :  { %v2135_v7 = vpop.f32.mrf.mxu1 }
 0x8bc   :  { %v1497_v7 = vrot.slane %v2771_v6, %v138_v35 }
 0x8bf   :  { %v1102_v9 = vpop.f32.mrf.mxu0 }
 0x8c0   :  { %v1156_v10 = vpack.c.bf16 %v1150_v47, %v1102_v9  ;;  %v2258_v47 = vld [vmem:[#allocation8 + $0x30] sm:$0xff]  }
 0x8c1   :  { %v2114_v11 = vpop.f32.mrf.mxu0 }
 0x8c2   :  { %2127 = vmatmul.mubr.msk.bf16.vlgmr.msra.gmra.mxu0 %vm385_vm1, %v1156_v10 }
 0x8c3   :  { %2137 = vmatpush3.bf16.xpose.msra.mxu0 %v1273_v12  ;;  %v1105_v13 = vpop.f32.mrf.mxu0  ;;  %2138 = vmatprep.mubr.msk.bf16.mxu0 %vm2464_vm0, %v2463_v1 }
 0x8c4   :  { %2148 = vmatprep.subr.bf16.mxu0 %v2463_v1 }
 0x8c5   :  { %v2115_v63 = vpop.f32.mrf.mxu0 }
 0x8ca   :  { %2139 = vmatmul.mubr.msk.bf16.vlgmr.msra.gmra.mxu0 %vm385_vm1, %v1266_v14 }
 0x8cb   :  { %2150 = vmatprep.mubr.msk.bf16.mxu0 %vm2464_vm0, %v2463_v1 }
 0x942   :  { %v1317_v15 = vpop.xlane.xlu0 %1316 }
 0x943   :  { %v1321_v16 = vsub.f32 %v1260_v0, %v1317_v15 }
 0x945   :  { %v1323_v18 = vmul.f32 1.442695, %v1321_v16 }
 0x947   :  { %2299 = vpow2.f32 %v1323_v18  ;;  %v2259_v18 = vld [vmem:[#allocation8 + $0x78] sm:$0xff]  }
 0x954   :  { %v2300_v19 = vpop.eup %2299 }
 0x955   :  { %v1327_v45 = vsel %vm478_vm3, %v2300_v19, 0.0 }
 0x956   :  { %1328 = vadd.xlane.f32.xlu0 %v1327_v45 }
 0x982   :  { %v1206_v49 = vpop.f32.mrf.mxu0 }
 0x983   :  { %v2743_v21 = vadd.f32 %v1206_v49, %v930_v20 }
 0x984   :  { %v2128_v22 = vpop.f32.mrf.mxu0 }
 0x986   :  { %v1209_v26 = vpop.f32.mrf.mxu0 }
 0x987   :  { %v2747_v27 = vadd.f32 %v1209_v26, %v933_v25  ;;  %v2262_v26 = vld [vmem:[#allocation8 + $0x60] sm:$0xff]  }
 0x988   :  { %v2129_v28 = vpop.f32.mrf.mxu0 }
 0x989   :  { %v2264_v28 = vld [vmem:[#allocation8 + $0x50] sm:$0xff]  }
 0x98a   :  { %v1309_v29 = vpop.f32.mrf.mxu0 }
 0x98b   :  { %v1310_v32 = vadd.f32 %v2601_v3, %v1309_v29  ;;  %v2265_v29 = vld [vmem:[#allocation8 + $0x48] sm:$0xff]  }
 0x98c   :  { %v2140_v33 = vpop.f32.mrf.mxu0 }
 0x98d   :  { %v1318_v34 = vsel %vm478_vm3, %v1310_v32, -inf }
 0x98e   :  { %1319 = vmax.xlane.f32.xlu1 %v1318_v34  ;;  %v1312_v36 = vpop.f32.mrf.mxu0 }
 0x990   :  { %v2141_v62 = vpop.f32.mrf.mxu0 }
 0x99f   :  { %1387 = vrot.lane.b32.xlu1 %v2590_v59, %s2466_s26 }
 0x9df   :  { %v1329_v41 = vpop.xlane.xlu0 %1328 }
 0xa17   :  { %v1320_v17 = vpop.xlane.xlu1 %1319 }
 0xa18   :  { %v1322_v37 = vsub.f32 %v1310_v32, %v1320_v17  ;;  %v2266_v32 = vld [vmem:[#allocation8 + $0x40] sm:$0xff]  }
 0xa1a   :  { %v1325_v38 = vmul.f32 1.442695, %v1322_v37 }
 0xa1b   :  { %v1388_v4 = vpop.permute.xlu1 %1387 }
 0xa1c   :  { %2301 = vpow2.f32 %v1325_v38  ;;  %v1393_v40 = vsel %vm506_vm2, %v1388_v4, 0  ;;  %v1528_v38 = vrot.slane %v2771_v6, %v142_v31  ;;  %v2268_v31 = vld [vmem:[#allocation8 + $0xb0] sm:$0xff]  }
 0xa1d   :  { %2149 = vmatpush3.bf16.msra.mxu0 %v1393_v40  ;;  %2303 = vrcp.f32 %v1329_v41  ;;  %v1534_v40 = vrot.slane %v2771_v6, %v146_v50  ;;  %v2269_v50 = vld [vmem:[#allocation8 + $0xa8] sm:$0xff]  }
 0xa1e   :  { %2162 = vmatprep.subr.bf16.mxu0 %v2463_v1 }
 0xa29   :  { %v2302_v3 = vpop.eup %2301 }
 0xa2a   :  { %v1330_v39 = vsel %vm478_vm3, %v2302_v3, 0.0  ;;  %v2304_v59 = vpop.eup %2303 }
 0xa2b   :  { %1331 = vadd.xlane.f32.xlu0 %v1330_v39  ;;  %v1335_v43 = vmul.f32 %v2304_v59, %v2300_v19 }
 0xa2d   :  { %v1337_v53 = vpack.c.bf16 %v1335_v43, %v1335_v43 }
 0xa41   :  { %1339 = vrot.lane.b32.xlu0 %v2588_v58, %s2466_s26 }
 0xab4   :  { %v1332_v42 = vpop.xlane.xlu0 %1331 }
 0xab5   :  { %2305 = vrcp.f32 %v1332_v42 }
 0xab8   :  { %v1340_v46 = vpop.permute.xlu0 %1339 }
 0xab9   :  { %v1345_v48 = vsel %vm506_vm2, %v1340_v46, 0 }
 0xaba   :  { %2143 = vmatpush3.bf16.msra.mxu1 %v1345_v48 }
 0xabb   :  { %2154 = vmatprep.subr.bf16.mxu1 %v2463_v1 }
 0xabd   :  { %2145 = vmatmul.mubr.msk.bf16.vlgmr.msra.gmra.mxu1 %vm478_vm3, %v1337_v53  ;;  %v2267_v53 = vld [vmem:[#allocation8 + $0xb8] sm:$0xff]  }
 0xabe   :  { %2158 = vmatprep.mubr.msk.bf16.mxu1 %vm2464_vm0, %v2463_v1  ;;  %2155 = vmatpush3.bf16.msra.mxu1 %v2257_v52  ;;  %v2273_v52 = vld [vmem:[#allocation8 + $0x88] sm:$0xff]  }
 0xabf   :  { %2156 = vmatprep.subr.bf16.mxu1 %v2463_v1 }
 0xac2   :  { %v2306_v44 = vpop.eup %2305  ;;  %2157 = vmatpush3.bf16.msra.mxu1 %v2258_v47  ;;  %v2274_v47 = vld [vmem:[#allocation8 + $0x80] sm:$0xff]  }
 0xac3   :  { %v1336_v58 = vmul.f32 %v2306_v44, %v2302_v3  ;;  %2182 = vmatprep.subr.bf16.mxu1 %v2463_v1  ;;  %v2270_v44 = vld [vmem:[#allocation8 + $0xa0] sm:$0xff]  }
 0xac5   :  { %v1338_v51 = vpack.c.bf16 %v1336_v58, %v1336_v58  ;;  %v2271_v58 = vld [vmem:[#allocation8 + $0x98] sm:$0xff]  }
 0xac7   :  { %2151 = vmatmul.mubr.msk.bf16.vlgmr.msra.gmra.mxu0 %vm478_vm3, %v1338_v51  ;;  %v2272_v51 = vld [vmem:[#allocation8 + $0x90] sm:$0xff]  }
 0xac8   :  { %2178 = vmatprep.mubr.msk.bf16.mxu0 %vm2464_vm0, %v2463_v1  ;;  %2163 = vmatpush3.bf16.msra.mxu0 %v2259_v18 }
 0xac9   :  { %2164 = vmatprep.subr.bf16.mxu0 %v2463_v1 }
 0xb7d   :  { %v1381_v54 = vpop.f32.mrf.mxu1 }
 0xb7f   :  { %v2146_v55 = vpop.f32.mrf.mxu1 }
 0xb81   :  { %v1384_v56 = vpop.f32.mrf.mxu1 }
 0xb83   :  { %v2147_v57 = vpop.f32.mrf.mxu1 }
 0xb87   :  { %v1429_v60 = vpop.f32.mrf.mxu0 }
 0xb88   :  { %v1435_v61 = vpack.c.bf16 %v1429_v60, %v1381_v54  ;;  %v1557_v54 = vsub.s32 3, %v2550_v30 }
 0xb89   :  { %v2152_v0 = vpop.f32.mrf.mxu0 }
 0xb8a   :  { %2159 = vmatmul.mubr.msk.bf16.vlgmr.msra.gmra.mxu1 %vm385_vm1, %v1435_v61  ;;  %v1558_v55 = vrot.slane %v2771_v6, %v1557_v54 }
 0xb8b   :  { %v1432_v2 = vpop.f32.mrf.mxu0  ;;  %2198 = vmatprep.mubr.msk.bf16.mxu1 %vm2464_vm0, %v2463_v1  ;;  %2183 = vmatpush3.bf16.msra.mxu1 %v2267_v53 }
 0xb8c   :  { %2184 = vmatprep.subr.bf16.mxu1 %v2463_v1 }
 0xb8d   :  { %v2153_v5 = vpop.f32.mrf.mxu0 }
 0xb8f   :  { %2185 = vmatpush3.bf16.msra.mxu1 %v2268_v31 }
 0xb90   :  { %2186 = vmatprep.subr.bf16.mxu1 %v2463_v1 }
 0xb93   :  { %2187 = vmatpush3.bf16.msra.mxu1 %v2269_v50 }
 0xb94   :  { %2188 = vmatprep.subr.bf16.mxu1 %v2463_v1 }
 0xb97   :  { %2189 = vmatpush3.bf16.msra.mxu1 %v2270_v44 }
 0xb98   :  { %2190 = vmatprep.subr.bf16.mxu1 %v2463_v1 }
 0xb9b   :  { %2191 = vmatpush3.bf16.msra.mxu1 %v2271_v58 }
 0xb9c   :  { %2192 = vmatprep.subr.bf16.mxu1 %v2463_v1 }
 0xb9f   :  { %2193 = vmatpush3.bf16.msra.mxu1 %v2272_v51 }
 0xba0   :  { %2194 = vmatprep.subr.bf16.mxu1 %v2463_v1 }
 0xba3   :  { %2195 = vmatpush3.bf16.msra.mxu1 %v2273_v52 }
 0xba4   :  { %2196 = vmatprep.subr.bf16.mxu1 %v2463_v1 }
 0xba7   :  { %2197 = vmatpush3.bf16.msra.mxu1 %v2274_v47 }
 0xc4a   :  { %v1485_v8 = vpop.f32.mrf.mxu1 }
 0xc4b   :  { %v1492_v9 = vadd.f32 %v1485_v8, %v2743_v21 }
 0xc4c   :  { %v2160_v10 = vpop.f32.mrf.mxu1 }
 0xc4d   :  { %v1498_v11 = vadd.f32 %v1497_v7, %v1492_v9 }
 0xc4e   :  { %v1488_v12 = vpop.f32.mrf.mxu1 }
 0xc4f   :  { %v1493_v13 = vadd.f32 %v1488_v12, %v2747_v27  ;;  %v1500_v63 = vadd.f32 %v1498_v11, %v2532_v23  ;;  %v2260_v23 = vld [vmem:[#allocation8 + $0x70] sm:$0xff]   ;;  %v2263_v27 = vld [vmem:[#allocation8 + $0x58] sm:$0xff]  }
 0xc50   :  { %v2161_v14 = vpop.f32.mrf.mxu1  ;;  %2165 = vmatpush3.bf16.msra.mxu0 %v2260_v23 }
 0xc51   :  { %v1499_v15 = vadd.f32 %v1497_v7, %v1493_v13  ;;  %1502 = vadd.xlane.f32.xlu1 %v1500_v63  ;;  %2166 = vmatprep.subr.bf16.mxu0 %v2463_v1 }
 0xc53   :  { %v1501_v16 = vadd.f32 %v1499_v15, %v2534_v24  ;;  %v2261_v24 = vld [vmem:[#allocation8 + $0x68] sm:$0xff]  }
 0xc54   :  { %2167 = vmatpush3.bf16.msra.mxu0 %v2261_v24 }
 0xc55   :  { %1504 = vadd.xlane.f32.xlu0 %v1501_v16  ;;  %2168 = vmatprep.subr.bf16.mxu0 %v2463_v1 }
 0xc58   :  { %2169 = vmatpush3.bf16.msra.mxu0 %v2262_v26 }
 0xc59   :  { %2170 = vmatprep.subr.bf16.mxu0 %v2463_v1 }
 0xc5c   :  { %2171 = vmatpush3.bf16.msra.mxu0 %v2263_v27 }
 0xc5d   :  { %2172 = vmatprep.subr.bf16.mxu0 %v2463_v1 }
 0xc60   :  { %2173 = vmatpush3.bf16.msra.mxu0 %v2264_v28 }
 0xc61   :  { %2174 = vmatprep.subr.bf16.mxu0 %v2463_v1 }
 0xc64   :  { %2175 = vmatpush3.bf16.msra.mxu0 %v2265_v29 }
 0xc65   :  { %2176 = vmatprep.subr.bf16.mxu0 %v2463_v1 }
 0xc68   :  { %2177 = vmatpush3.bf16.msra.mxu0 %v2266_v32 }
 0xcda   :  { %v1503_v35 = vpop.xlane.xlu1 %1502 }
 0xcdb   :  { %v1507_v19 = vmul.f32 0.0078125, %v1503_v35 }
 0xcdd   :  { %v1509_v45 = vsub.f32 %v1500_v63, %v1507_v19 }
 0xcde   :  { %v1505_v20 = vpop.xlane.xlu0 %1504 }
 0xcdf   :  { %v1508_v49 = vmul.f32 0.0078125, %v1505_v20  ;;  %v1511_v21 = vmul.f32 %v1509_v45, %v1509_v45 }
 0xce1   :  { %v1510_v22 = vsub.f32 %v1501_v16, %v1508_v49  ;;  %1513 = vadd.xlane.f32.xlu0 %v1511_v21  ;;  %v1686_v21 = vsub.s32 4, %v2550_v30 }
 0xce3   :  { %v1512_v25 = vmul.f32 %v1510_v22, %v1510_v22 }
 0xce5   :  { %1515 = vadd.xlane.f32.xlu1 %v1512_v25 }
 0xd6a   :  { %v1514_v33 = vpop.xlane.xlu0 %1513 }
 0xd6b   :  { %v1517_v34 = vmul.f32 0.0078125, %v1514_v33 }
 0xd6d   :  { %v1519_v36 = vadd.f32 1e-05, %v1517_v34 }
 0xd6e   :  { %v1516_v62 = vpop.xlane.xlu1 %1515 }
 0xd6f   :  { %2307 = vrsqrt.f32 %v1519_v36  ;;  %v1518_v17 = vmul.f32 0.0078125, %v1516_v62 }
 0xd71   :  { %v1520_v37 = vadd.f32 1e-05, %v1518_v17 }
 0xd73   :  { %2309 = vrsqrt.f32 %v1520_v37 }
 0xd7c   :  { %v2308_v4 = vpop.eup %2307 }
 0xd7d   :  { %v1523_v3 = vmul.f32 %v2308_v4, %v1509_v45 }
 0xd7f   :  { %v1529_v39 = vmul.f32 %v1528_v38, %v1523_v3 }
 0xd80   :  { %v2310_v41 = vpop.eup %2309 }
 0xd81   :  { %v1524_v59 = vmul.f32 %v2310_v41, %v1510_v22  ;;  %v2793_v42 = vadd.f32 %v1534_v40, %v1529_v39  ;;  %v1687_v22 = vrot.slane %v2771_v6, %v1686_v21 }
 0xd83   :  { %v1530_v43 = vmul.f32 %v1528_v38, %v1524_v59  ;;  %v1801_v59 = vsub.s32 5, %v2550_v30 }
 0xd85   :  { %v2795_v46 = vadd.f32 %v1534_v40, %v1530_v43  ;;  %v1807_v43 = vsub.s32 6, %v2550_v30 }
 0xd87   :  { %v1554_v48 = vpack.c.bf16 %v2795_v46, %v2793_v42  ;;  %v1808_v50 = vrot.slane %v2771_v6, %v1807_v43 }
 0xd89   :  { %2179 = vmatmul.mubr.bf16.vlgmr.msra.gmra.mxu0 %v1554_v48  ;;  %v1802_v48 = vrot.slane %v2771_v6, %v1801_v59 }
 0xe49   :  { %v1641_v56 = vpop.f32.mrf.mxu0 }
 0xe4a   :  { %v1642_v57 = vadd.f32 %v1641_v56, %v1558_v55 }
 0xe4b   :  { %v2180_v60 = vpop.f32.mrf.mxu0 }
 0xe4c   :  { %v1648_v61 = vmul.f32 %v1642_v57, %v1642_v57 }
 0xe4d   :  { %v1644_v0 = vpop.f32.mrf.mxu0 }
 0xe4e   :  { %v1650_v2 = vmul.f32 %v1648_v61, %v1642_v57  ;;  %v1645_v5 = vadd.f32 %v1644_v0, %v1558_v55 }
 0xe4f   :  { %v2181_v7 = vpop.f32.mrf.mxu0 }
 0xe50   :  { %v1652_v8 = vmul.f32 0.044715, %v1650_v2  ;;  %v1649_v9 = vmul.f32 %v1645_v5, %v1645_v5 }
 0xe52   :  { %v1654_v10 = vadd.f32 %v1652_v8, %v1642_v57  ;;  %v1651_v11 = vmul.f32 %v1649_v9, %v1645_v5 }
 0xe54   :  { %v1656_v12 = vmul.f32 0.7978846, %v1654_v10  ;;  %v1653_v1 = vmul.f32 0.044715, %v1651_v11 }
 0xe56   :  { %2311 = vtanh.f32 %v1656_v12  ;;  %v1655_v13 = vadd.f32 %v1653_v1, %v1645_v5 }
 0xe58   :  { %v1657_v63 = vmul.f32 0.7978846, %v1655_v13 }
 0xe5a   :  { %2313 = vtanh.f32 %v1657_v63 }
 0xe63   :  { %v2312_v14 = vpop.eup %2311 }
 0xe64   :  { %v1660_v15 = vadd.f32 1.0, %v2312_v14 }
 0xe66   :  { %v1662_v18 = vmul.f32 0.5, %v1660_v15 }
 0xe67   :  { %v2314_v16 = vpop.eup %2313 }
 0xe68   :  { %v1661_v35 = vadd.f32 1.0, %v2314_v16  ;;  %v1664_v45 = vmul.f32 %v1662_v18, %v1642_v57  ;;  %v1938_v18 = vld [vmem:[#allocation10 + $0x8] ss:$0 sm:$0xff] }
 0xe6a   :  { %v1663_v19 = vmul.f32 0.5, %v1661_v35 }
 0xe6c   :  { %v1665_v20 = vmul.f32 %v1663_v19, %v1645_v5 }
 0xe6e   :  { %v1683_v49 = vpack.c.bf16 %v1665_v20, %v1664_v45 }
 0xe70   :  { %2199 = vmatmul.mubr.bf16.vlgmr.msra.gmra.mxu1 %v1683_v49 }
 0xf30   :  { %v1770_v25 = vpop.f32.mrf.mxu1 }
 0xf31   :  { %v1771_v23 = vadd.f32 %v1770_v25, %v1687_v22 }
 0xf32   :  { %v2200_v24 = vpop.f32.mrf.mxu1 }
 0xf33   :  { %1777 = vadd.xlane.f32.xlu0 %v1771_v23 }
 0xf34   :  { %v1773_v26 = vpop.f32.mrf.mxu1 }
 0xf35   :  { %v1774_v27 = vadd.f32 %v1773_v26, %v1687_v22 }
 0xf36   :  { %v2201_v28 = vpop.f32.mrf.mxu1 }
 0xf37   :  { %1779 = vadd.xlane.f32.xlu1 %v1774_v27 }
 0xfbc   :  { %v1778_v29 = vpop.xlane.xlu0 %1777 }
 0xfbd   :  { %v1781_v32 = vmul.f32 0.0078125, %v1778_v29 }
 0xfbf   :  { %v1783_v33 = vsub.f32 %v1771_v23, %v1781_v32 }
 0xfc0   :  { %v1780_v34 = vpop.xlane.xlu1 %1779 }
 0xfc1   :  { %v1782_v36 = vmul.f32 0.0078125, %v1780_v34  ;;  %v1785_v62 = vmul.f32 %v1783_v33, %v1783_v33 }
 0xfc3   :  { %v1784_v17 = vsub.f32 %v1774_v27, %v1782_v36  ;;  %1787 = vadd.xlane.f32.xlu0 %v1785_v62 }
 0xfc5   :  { %v1786_v37 = vmul.f32 %v1784_v17, %v1784_v17 }
 0xfc7   :  { %1789 = vadd.xlane.f32.xlu1 %v1786_v37 }
0x104c   :  { %v1788_v38 = vpop.xlane.xlu0 %1787 }
0x104d   :  { %v1791_v4 = vmul.f32 0.0078125, %v1788_v38 }
0x104f   :  { %v1793_v40 = vadd.f32 1e-05, %v1791_v4 }
0x1050   :  { %v1790_v3 = vpop.xlane.xlu1 %1789 }
0x1051   :  { %2315 = vrsqrt.f32 %v1793_v40  ;;  %v1792_v39 = vmul.f32 0.0078125, %v1790_v3 }
0x1053   :  { %v1794_v41 = vadd.f32 1e-05, %v1792_v39 }
0x1055   :  { %2317 = vrsqrt.f32 %v1794_v41 }
0x105e   :  { %v2316_v53 = vpop.eup %2315 }
0x105f   :  { %v1797_v31 = vmul.f32 %v2316_v53, %v1783_v33 }
0x1061   :  { %v1803_v44 = vmul.f32 %v1802_v48, %v1797_v31 }
0x1062   :  { %v2318_v58 = vpop.eup %2317 }
0x1063   :  { %v1809_v51 = vadd.f32 %v1808_v50, %v1803_v44  ;;  %v1798_v52 = vmul.f32 %v2318_v58, %v1784_v17 }
0x1065   :  { %v1811_v47 = vadd.f32 %v1809_v51, %v2793_v42  ;;  %v1804_v54 = vmul.f32 %v1802_v48, %v1798_v52 }
0x1067   :  { %v1813_v55 = vadd.f32 %v1811_v47, %v2793_v42  ;;  %v1810_v56 = vadd.f32 %v1808_v50, %v1804_v54 }
0x1069   :  { %1815 = vadd.xlane.f32.xlu0 %v1813_v55  ;;  %v1812_v57 = vadd.f32 %v1810_v56, %v2795_v46 }
0x106b   :  { %v1814_v60 = vadd.f32 %v1812_v57, %v2795_v46  ;;  %v1839_v46 = vsub.s32 7, %v2550_v30 }
0x106d   :  { %1817 = vadd.xlane.f32.xlu1 %v1814_v60  ;;  %v1840_v14 = vrot.slane %v2771_v6, %v1839_v46 }
0x10f2   :  { %v1816_v61 = vpop.xlane.xlu0 %1815 }
0x10f3   :  { %v1819_v0 = vmul.f32 0.0078125, %v1816_v61 }
0x10f5   :  { %v1821_v2 = vsub.f32 %v1813_v55, %v1819_v0 }
0x10f6   :  { %v1818_v5 = vpop.xlane.xlu1 %1817 }
0x10f7   :  { %v1820_v7 = vmul.f32 0.0078125, %v1818_v5  ;;  %v1823_v8 = vmul.f32 %v1821_v2, %v1821_v2 }
0x10f9   :  { %v1822_v9 = vsub.f32 %v1814_v60, %v1820_v7  ;;  %1825 = vadd.xlane.f32.xlu0 %v1823_v8 }
0x10fb   :  { %v1824_v10 = vmul.f32 %v1822_v9, %v1822_v9 }
0x10fd   :  { %1827 = vadd.xlane.f32.xlu1 %v1824_v10 }
0x1182   :  { %v1826_v11 = vpop.xlane.xlu0 %1825 }
0x1183   :  { %v1829_v12 = vmul.f32 0.0078125, %v1826_v11 }
0x1185   :  { %v1831_v42 = vadd.f32 1e-05, %v1829_v12 }
0x1186   :  { %v1828_v1 = vpop.xlane.xlu1 %1827 }
0x1187   :  { %2319 = vrsqrt.f32 %v1831_v42  ;;  %v1830_v13 = vmul.f32 0.0078125, %v1828_v1 }
0x1189   :  { %v1832_v63 = vadd.f32 1e-05, %v1830_v13 }
0x118b   :  { %2321 = vrsqrt.f32 %v1832_v63 }
0x1194   :  { %v2320_v15 = vpop.eup %2319 }
0x1195   :  { %v1835_v16 = vmul.f32 %v2320_v15, %v1821_v2 }
0x1197   :  { %v1841_v35 = vmul.f32 %v1840_v14, %v1835_v16 }
0x1198   :  { %v2322_v19 = vpop.eup %2321 }
0x1199   :  { %v1836_v45 = vmul.f32 %v2322_v19, %v1822_v9  ;;  %v1847_v20 = vadd.f32 %v1938_v18, %v1841_v35 }
0x119b   :  { %v1842_v49 = vmul.f32 %v1840_v14, %v1836_v45  ;;  %1849 = vst [vmem:[#allocation11] sm:$0xff] %v1847_v20 }
0x119d   :  { %v1848_v21 = vadd.f32 %v1938_v18, %v1842_v49 }
0x119f   :  { %1850 = vst [vmem:[#allocation11 + $0x8] sm:$0xff] %v1848_v21 }
0x11a0   :  { %2434 = shalt.err (!%p2431_p1)
}
0x11a1   :  { %1862 = dma.vmem_to_hbm [thread:$0]  %s1857_s27, 256, %s2832_s6, [#allocation4], %s2456_s11, %s2456_s11, %s2457_s12  }
0x11a2   :  { %2449 = dma.done.wait [#allocation4], 256  }
0x11a3   :  { %2450 = vsyncadd [#allocation4], 4294967040 }
0x11a4   :  { %1866 = vsyncpa [#allocation3], 1 }
0x11a5   :  { %1867 = vsyncpa [#allocation6], 1 }
0x11a6   :  { %1868 = vsyncpa [#allocation9], 1 }
0x11a7   :  { %1869 = vsyncpa [#allocation4], 1 }

</bundles_post_ra>
